<compile_context>
chip_gen: v6e
topology: v6e:2x2x1
jax: 0.10.0
libtpu: 0.0.40
codegen_flags: <defaults>
</compile_context>

<pallas_src>
import functools

import numpy as np
import jax
import jax.numpy as jnp
from jax.experimental import pallas as pl
from jax.experimental.pallas import tpu as pltpu


def _gin_kernel(x_ref, a_ref, p_ref,
                w1a_ref, whh_ref, wl1_ref, wl2_ref, b_ref,
                out_ref,
                h1_ref, g1_ref, g2_ref,
                *, a_resident):
    """grid = (2, n_row_tiles): phase 0 = conv1, phase 1 = conv2 (+ head on last step)."""
    phase = pl.program_id(0)
    i = pl.program_id(1)
    n_tiles = pl.num_programs(1)

    tm = p_ref.shape[1]            # node rows per tile (pool stripe width)
    H = whh_ref.shape[1]           # dim_h
    C_out = wl2_ref.shape[1]
    bf16 = jnp.bfloat16

    def mm(a, b):                  # bf16 x bf16 MXU matmul, f32 accumulation
        return jnp.dot(a, b, preferred_element_type=jnp.float32)

    row0 = pl.multiple_of(i * tm, tm)

    def a_stripe():
        # int8 -> bf16 cast on the VPU (exact for small integer degree counts).
        if a_resident:
            return a_ref[pl.ds(row0, tm), :].astype(bf16)   # slice of resident A_hat
        return a_ref[...].astype(bf16)                      # streamed (tm, N) stripe

    @pl.when((phase == 0) & (i == 0))
    def _init():
        g1_ref[...] = jnp.zeros_like(g1_ref)
        g2_ref[...] = jnp.zeros_like(g2_ref)

    @pl.when(phase == 0)
    def _conv1():
        # GINConv1 = MLP(A_hat @ x); BatchNorm already folded into w1a / bias row 0.
        agg = mm(a_stripe(), x_ref[...])                                      # (tm, C_in)
        t = jnp.maximum(mm(agg.astype(bf16), w1a_ref[...]) + b_ref[0:1, 0:H], 0.0)
        h1 = jnp.maximum(mm(t.astype(bf16), whh_ref[0:H, :]) + b_ref[1:2, 0:H], 0.0)
        h1b = h1.astype(bf16)
        h1_ref[pl.ds(row0, tm), :] = h1b
        # global_add_pool partial sum for this stripe (f32 accumulator).
        g1_ref[...] += mm(p_ref[...], h1b)

    @pl.when(phase == 1)
    def _conv2():
        # GINConv2 = MLP(A_hat @ h1); h1 for all nodes lives in VMEM scratch.
        agg = mm(a_stripe(), h1_ref[...])                                     # (tm, H)
        t = jnp.maximum(mm(agg.astype(bf16), whh_ref[H:2 * H, :]) + b_ref[2:3, 0:H], 0.0)
        h2 = jnp.maximum(mm(t.astype(bf16), whh_ref[2 * H:3 * H, :]) + b_ref[3:4, 0:H], 0.0)
        g2_ref[...] += mm(p_ref[...], h2.astype(bf16))

    @pl.when((phase == 1) & (i == n_tiles - 1))
    def _head():
        g1 = g1_ref[...].astype(bf16)                                         # (G, H)
        g2 = g2_ref[...].astype(bf16)
        # lin1 on concat([g1, g2], dim=1) as a split matmul (no concat needed).
        h = jnp.maximum(mm(g1, wl1_ref[0:H, :]) + mm(g2, wl1_ref[H:2 * H, :])
                        + b_ref[4:5, :], 0.0)
        # F.dropout(p=0.6) is identity in eval / inference mode.
        logits = mm(h.astype(bf16), wl2_ref[...]) + b_ref[5:6, 0:C_out]
        m = jnp.max(logits, axis=1, keepdims=True)
        z = logits - m
        out_ref[...] = z - jnp.log(jnp.sum(jnp.exp(z), axis=1, keepdims=True))


def _vmem_capacity_bytes():
    try:
        return int(pltpu.get_tpu_info().vmem_capacity_bytes)
    except Exception:
        return 64 * 1024 * 1024       # conservative fallback (v7x per-core VMEM)


def _spec(shape, index_map, *, buffers=None):
    """BlockSpec with optional explicit buffer count (falls back if unsupported)."""
    if buffers is not None:
        try:
            return pl.BlockSpec(shape, index_map, pipeline_mode=pl.Buffered(buffers))
        except (TypeError, AttributeError):
            pass   # older jax: no pipeline_mode -> default double buffering
    return pl.BlockSpec(shape, index_map)


def gin_forward(x, a_hat_i8, pool_bf16, params, *, tile_rows=None):
    """Fused GIN forward. A_hat int8, pool/weights bf16, biases f32, output f32 log-probs."""
    w1a, whh, wl1, wl2, bias = params
    N, C_in = x.shape
    H = whh.shape[1]
    G = pool_bf16.shape[0]
    C_out = wl2.shape[1]

    x_bf16 = x.astype(jnp.bfloat16)                 # cast once on the host

    vmem_limit = int(_vmem_capacity_bytes() * 0.85)   # ~108 MiB on v5e/v6e, ~54 MiB on v7x

    if tile_rows is None:
        divisors = [c for c in (1024, 512, 256, 128) if N % c == 0]
        tile_rows = N
        for c in divisors:                           # descending: pick the largest that fits
            if 2 * c * N + N * H * 2 <= vmem_limit // 4:
                tile_rows = c
                break
        else:
            if divisors:
                tile_rows = divisors[-1]
    if N % tile_rows != 0:
        raise ValueError("N must be divisible by tile_rows")
    if tile_rows != N and tile_rows % 128 != 0:
        raise ValueError("tile_rows must be a multiple of 128 (or equal to N)")
    tm = tile_rows
    n_tiles = N // tm

    # Decide whether A_hat (int8) can stay whole-resident (fetched from HBM once).
    const_bytes = (x_bf16.nbytes + N * H * 2 + 2 * G * H * 4 + G * C_out * 4
                   + w1a.nbytes + whh.nbytes + wl1.nbytes + wl2.nbytes + bias.nbytes
                   + 2 * (G * tm * 2))               # double-buffered P stripes
    work_bytes = 4 * tm * N * 2 + 8 * tm * H * 4     # stripe cast + f32 intermediates margin
    a_resident = const_bytes + N * N + work_bytes <= int(vmem_limit * 0.9)

    flops = (2 * N * N * C_in + 2 * N * N * H            # A_hat aggregations
             + 2 * N * C_in * H + 6 * N * H * H          # conv MLPs
             + 4 * N * G * H                             # global_add_pool
             + 2 * G * 2 * H * 3 * H + 2 * G * 3 * H * C_out)
    a_reads = 1 if a_resident else 2
    bytes_accessed = (x_bf16.nbytes + a_reads * a_hat_i8.nbytes + pool_bf16.nbytes
                      + w1a.nbytes + whh.nbytes + wl1.nbytes + wl2.nbytes
                      + bias.nbytes + G * C_out * 4)

    if a_resident:
        a_spec = _spec((N, N), lambda p, i: (0, 0), buffers=1)     # fetched once, single buffer
    else:
        # TODO(synk): for exposed DMA at the phase boundary, sweep pl.Buffered(3) here.
        a_spec = pl.BlockSpec((tm, N), lambda p, i: (i, 0))        # streamed row stripes

    in_specs = [
        _spec((N, C_in), lambda p, i: (0, 0), buffers=1),          # x (bf16, resident)
        a_spec,                                                    # A_hat (int8)
        pl.BlockSpec((G, tm), lambda p, i: (0, i)),                # pool column stripe (bf16)
        _spec((C_in, H), lambda p, i: (0, 0), buffers=1),          # w1a (BN folded)
        _spec((3 * H, H), lambda p, i: (0, 0), buffers=1),         # [w1b; w2a(BN folded); w2b]
        _spec((2 * H, 3 * H), lambda p, i: (0, 0), buffers=1),     # lin1 weight
        _spec((3 * H, C_out), lambda p, i: (0, 0), buffers=1),     # lin2 weight
        _spec((6, 3 * H), lambda p, i: (0, 0), buffers=1),         # packed bias slab (f32)
    ]
    out_spec = pl.BlockSpec((G, C_out), lambda p, i: (0, 0))

    kernel = functools.partial(_gin_kernel, a_resident=a_resident)

    return pl.pallas_call(
        kernel,
        out_shape=jax.ShapeDtypeStruct((G, C_out), jnp.float32),
        grid_spec=pltpu.PrefetchScalarGridSpec(
            num_scalar_prefetch=0,
            grid=(2, n_tiles),
            in_specs=in_specs,
            out_specs=out_spec,
            scratch_shapes=[
                pltpu.VMEM((N, H), jnp.bfloat16),    # h1 for all nodes
                pltpu.VMEM((G, H), jnp.float32),     # pooled conv1 accumulator
                pltpu.VMEM((G, H), jnp.float32),     # pooled conv2 accumulator
            ],
        ),
        compiler_params=pltpu.CompilerParams(
            dimension_semantics=("arbitrary", "arbitrary"),
            vmem_limit_bytes=vmem_limit,
        ),
        cost_estimate=pl.CostEstimate(
            flops=flops,
            transcendentals=G * (C_out + 1),
            bytes_accessed=bytes_accessed),
    )(x_bf16, a_hat_i8, pool_bf16, w1a, whh, wl1, wl2, bias)


def pack_params(w1a, b1a, s1, t1, w1b, b1b,
                w2a, b2a, s2, t2, w2b, b2b,
                wl1, bl1, wl2, bl2):
    """Fold eval-mode BatchNorm into the preceding Linear and pack small operands."""
    bf16 = jnp.bfloat16
    w1a_f = (w1a * s1).astype(bf16)          # Linear -> BN fold: w' = w*s, b' = b*s + t
    b1a_f = b1a * s1 + t1
    w2a_f = w2a * s2
    b2a_f = b2a * s2 + t2
    H = w1b.shape[0]
    width = 3 * H
    whh = jnp.concatenate([w1b, w2a_f, w2b], axis=0).astype(bf16)        # (3H, H)

    def row(v):
        return jnp.pad(v, ((0, 0), (0, width - v.shape[1])))

    bias = jnp.concatenate([row(b1a_f), row(b1b), row(b2a_f), row(b2b),
                            row(bl1), row(bl2)], axis=0).astype(jnp.float32)  # (6, 3H)
    return (w1a_f, whh, wl1.astype(bf16), wl2.astype(bf16), bias)


def gin_reference(x, a_hat_i8, pool_bf16, params):
    """Pure-JAX mirror of the kernel math (same bf16 casts, f32 accumulation)."""
    w1a, whh, wl1, wl2, bias = params
    bf16 = jnp.bfloat16
    H = whh.shape[1]
    C_out = wl2.shape[1]

    def mm(a, b):
        return jnp.dot(a, b, preferred_element_type=jnp.float32)

    a = a_hat_i8.astype(bf16)
    b1a, b1b, b2a, b2b = bias[0:1, :H], bias[1:2, :H], bias[2:3, :H], bias[3:4, :H]
    bl1, bl2 = bias[4:5, :], bias[5:6, :C_out]

    agg1 = mm(a, x.astype(bf16))
    t = jnp.maximum(mm(agg1.astype(bf16), w1a) + b1a, 0.0)
    h1 = jnp.maximum(mm(t.astype(bf16), whh[:H]) + b1b, 0.0).astype(bf16)

    agg2 = mm(a, h1)
    t = jnp.maximum(mm(agg2.astype(bf16), whh[H:2 * H]) + b2a, 0.0)
    h2 = jnp.maximum(mm(t.astype(bf16), whh[2 * H:]) + b2b, 0.0).astype(bf16)

    g1 = mm(pool_bf16, h1).astype(bf16)
    g2 = mm(pool_bf16, h2).astype(bf16)
    h = jnp.maximum(mm(g1, wl1[:H]) + mm(g2, wl1[H:]) + bl1, 0.0)
    logits = mm(h.astype(bf16), wl2) + bl2
    return jax.nn.log_softmax(logits, axis=1)


def linear_init(key, fan_in, fan_out):
    kw, kb = jax.random.split(key)
    bound = 1.0 / np.sqrt(fan_in)
    w = jax.random.uniform(kw, (fan_in, fan_out), jnp.float32, -bound, bound)
    b = jax.random.uniform(kb, (1, fan_out), jnp.float32, -bound, bound)
    return w, b


if __name__ == "__main__":
    N = 256       # total nodes across the batch
    C_in = 8      # input_channels
    H = 32        # dim_h
    C_out = 4     # output_channels
    G = 2         # graphs in the batch
    E = 768       # directed edges
    TM = 128      # node rows per grid tile -> (2, 2) grid exercising stripe accumulation

    key = jax.random.PRNGKey(0)
    keys = jax.random.split(key, 12)

    x = jax.random.normal(keys[0], (N, C_in), jnp.float32)

    # edge_index (2, E): messages flow src -> dst (GINConv sum aggregation)
    src = jax.random.randint(keys[1], (E,), 0, N)
    dst = jax.random.randint(keys[2], (E,), 0, N)
    eps = 0.0  # GINConv default eps -> integer entries, exact in int8
    # TODO(synk): for non-integer eps, carry the (1+eps) self term as a separate scale.
    counts = jnp.zeros((N, N), jnp.int32).at[dst, src].add(1)
    a_hat_i8 = (counts + jnp.eye(N, dtype=jnp.int32)).astype(jnp.int8)   # A + (1+eps)*I

    # batch vector: first half of the nodes -> graph 0, second half -> graph 1
    batch = jnp.concatenate([jnp.zeros(N // 2, jnp.int32), jnp.ones(N // 2, jnp.int32)])
    pool = (batch[None, :] == jnp.arange(G)[:, None]).astype(jnp.bfloat16)   # (G, N)

    # conv1 MLP: Linear(C_in,H) -> BN(H) -> ReLU -> Linear(H,H) -> ReLU
    w1a, b1a = linear_init(keys[3], C_in, H)
    gamma1 = jax.random.uniform(keys[4], (1, H), jnp.float32, 0.5, 1.5)
    beta1 = jax.random.normal(keys[5], (1, H)) * 0.1
    bn_eps = 1e-5
    s1 = gamma1 / jnp.sqrt(jnp.ones((1, H)) + bn_eps)    # running_var = 1
    t1 = beta1 - jnp.zeros((1, H)) * s1                  # running_mean = 0
    w1b, b1b = linear_init(keys[6], H, H)

    # conv2 MLP: Linear(H,H) -> BN(H) -> ReLU -> Linear(H,H) -> ReLU
    w2a, b2a = linear_init(keys[7], H, H)
    gamma2 = jax.random.uniform(keys[8], (1, H), jnp.float32, 0.5, 1.5)
    beta2 = jax.random.normal(keys[9], (1, H)) * 0.1
    s2 = gamma2 / jnp.sqrt(jnp.ones((1, H)) + bn_eps)
    t2 = beta2 - jnp.zeros((1, H)) * s2
    w2b, b2b = linear_init(keys[10], H, H)

    # classifier head: lin1 (2H -> 3H), lin2 (3H -> C_out)
    wl1, bl1 = linear_init(keys[11], 2 * H, 3 * H)
    wl2, bl2 = linear_init(jax.random.PRNGKey(42), 3 * H, C_out)

    params = pack_params(w1a, b1a, s1, t1, w1b, b1b,
                         w2a, b2a, s2, t2, w2b, b2b,
                         wl1, bl1, wl2, bl2)

    out = gin_forward(x, a_hat_i8, pool, params, tile_rows=TM)
    out = jax.block_until_ready(out)

    ref = gin_reference(x, a_hat_i8, pool, params)
    # Pooling is accumulated stripe-wise in the kernel (f32 partial sums), so allow
    # bf16-level tolerance vs the single-matmul reference.
    np.testing.assert_allclose(np.asarray(out), np.asarray(ref), rtol=1e-2, atol=1e-2)

    print("KERNEL_OK")
</pallas_src>

<mosaic_0001>
module attributes {stable_mosaic.version = 11 : i64} {
  func.func @_gin_kernel(%arg0: i32, %arg1: i32, %arg2: memref<256x8xbf16, #tpu.memory_space<vmem>>, %arg3: memref<256x256xi8, #tpu.memory_space<vmem>>, %arg4: memref<2x128xbf16, #tpu.memory_space<vmem>>, %arg5: memref<8x32xbf16, #tpu.memory_space<vmem>>, %arg6: memref<96x32xbf16, #tpu.memory_space<vmem>>, %arg7: memref<64x96xbf16, #tpu.memory_space<vmem>>, %arg8: memref<96x4xbf16, #tpu.memory_space<vmem>>, %arg9: memref<6x96xf32, #tpu.memory_space<vmem>>, %arg10: memref<2x4xf32, #tpu.memory_space<vmem>>, %arg11: memref<256x32xbf16, #tpu.memory_space<vmem>>, %arg12: memref<2x32xf32, #tpu.memory_space<vmem>>, %arg13: memref<2x32xf32, #tpu.memory_space<vmem>>) attributes {dimension_semantics = [#tpu.dimension_semantics<arbitrary>, #tpu.dimension_semantics<arbitrary>], iteration_bounds = array<i64: 2, 2>, scalar_prefetch = 0 : i64, scratch_operands = 3 : i64, tpu.core_type = #tpu.core_type<tc>, window_params = [{pipeline_mode = #tpu.pipeline_mode<synchronous>, transform_indices = @transform_0, window_bounds = array<i64: 256, 8>}, {pipeline_mode = #tpu.pipeline_mode<synchronous>, transform_indices = @transform_1, window_bounds = array<i64: 256, 256>}, {transform_indices = @transform_2, window_bounds = array<i64: 2, 128>}, {pipeline_mode = #tpu.pipeline_mode<synchronous>, transform_indices = @transform_3, window_bounds = array<i64: 8, 32>}, {pipeline_mode = #tpu.pipeline_mode<synchronous>, transform_indices = @transform_4, window_bounds = array<i64: 96, 32>}, {pipeline_mode = #tpu.pipeline_mode<synchronous>, transform_indices = @transform_5, window_bounds = array<i64: 64, 96>}, {pipeline_mode = #tpu.pipeline_mode<synchronous>, transform_indices = @transform_6, window_bounds = array<i64: 96, 4>}, {pipeline_mode = #tpu.pipeline_mode<synchronous>, transform_indices = @transform_7, window_bounds = array<i64: 6, 96>}, {pipeline_mode = #tpu.pipeline_mode<synchronous>, transform_indices = @transform_8, window_bounds = array<i64: 2, 4>}]} {
    %c128_i32 = arith.constant 128 : i32
    %0 = arith.muli %arg1, %c128_i32 : i32
    %1 = tpu.assume_multiple %0, 128 : i32
    %c0_i32 = arith.constant 0 : i32
    %2 = arith.cmpi eq, %arg0, %c0_i32 : i32
    %c0_i32_0 = arith.constant 0 : i32
    %3 = arith.cmpi eq, %arg1, %c0_i32_0 : i32
    %4 = arith.andi %2, %3 : i1
    %5 = arith.extui %4 : i1 to i32
    %c0_i32_1 = arith.constant 0 : i32
    %6 = arith.cmpi ne, %5, %c0_i32_1 : i32
    scf.if %6 {
      %cst = arith.constant 0.000000e+00 : f32
      %18 = vector.broadcast %cst : f32 to vector<2x32xf32>
      %c0 = arith.constant 0 : index
      %c0_8 = arith.constant 0 : index
      %19 = vector.load %arg12[%c0, %c0_8] : memref<2x32xf32, #tpu.memory_space<vmem>>, vector<2x32xf32>
      tpu.vector_store %arg12[%c0, %c0_8], %18 {strides = array<i32>} : memref<2x32xf32, #tpu.memory_space<vmem>>, vector<2x32xf32>,
      %cst_9 = arith.constant 0.000000e+00 : f32
      %20 = vector.broadcast %cst_9 : f32 to vector<2x32xf32>
      %c0_10 = arith.constant 0 : index
      %c0_11 = arith.constant 0 : index
      %21 = vector.load %arg13[%c0_10, %c0_11] : memref<2x32xf32, #tpu.memory_space<vmem>>, vector<2x32xf32>
      tpu.vector_store %arg13[%c0_10, %c0_11], %20 {strides = array<i32>} : memref<2x32xf32, #tpu.memory_space<vmem>>, vector<2x32xf32>,
    } else {
    }
    %c0_i32_2 = arith.constant 0 : i32
    %7 = arith.cmpi eq, %arg0, %c0_i32_2 : i32
    %8 = arith.extui %7 : i1 to i32
    %c0_i32_3 = arith.constant 0 : i32
    %9 = arith.cmpi ne, %8, %c0_i32_3 : i32
    scf.if %9 {
      %18 = arith.index_cast %1 : i32 to index
      %c0 = arith.constant 0 : index
      %19 = vector.load %arg3[%18, %c0] : memref<256x256xi8, #tpu.memory_space<vmem>>, vector<128x256xi8>
      %20 = arith.sitofp %19 : vector<128x256xi8> to vector<128x256xbf16>
      %c0_8 = arith.constant 0 : index
      %c0_9 = arith.constant 0 : index
      %21 = vector.load %arg2[%c0_8, %c0_9] : memref<256x8xbf16, #tpu.memory_space<vmem>>, vector<256x8xbf16>
      %cst = arith.constant dense<0.000000e+00> : vector<128x8xf32>
      %22 = tpu.matmul %20, %21, %cst {dimension_numbers = #tpu.dot_dimension_numbers<[1], [0], [0], [1], [0, 0, 1, 1], [], []>} : vector<128x256xbf16>, vector<256x8xbf16>, vector<128x8xf32> -> vector<128x8xf32>
      %23 = arith.truncf %22 : vector<128x8xf32> to vector<128x8xbf16>
      %c0_10 = arith.constant 0 : index
      %c0_11 = arith.constant 0 : index
      %24 = vector.load %arg5[%c0_10, %c0_11] : memref<8x32xbf16, #tpu.memory_space<vmem>>, vector<8x32xbf16>
      %cst_12 = arith.constant dense<0.000000e+00> : vector<128x32xf32>
      %25 = tpu.matmul %23, %24, %cst_12 {dimension_numbers = #tpu.dot_dimension_numbers<[1], [0], [0], [1], [0, 0, 1, 1], [], []>} : vector<128x8xbf16>, vector<8x32xbf16>, vector<128x32xf32> -> vector<128x32xf32>
      %c0_13 = arith.constant 0 : index
      %c0_14 = arith.constant 0 : index
      %26 = vector.load %arg9[%c0_13, %c0_14] : memref<6x96xf32, #tpu.memory_space<vmem>>, vector<1x32xf32>
      %27 = vector.broadcast %26 : vector<1x32xf32> to vector<128x32xf32>
      %28 = arith.addf %25, %27 : vector<128x32xf32>
      %cst_15 = arith.constant 0.000000e+00 : f32
      %29 = vector.broadcast %cst_15 : f32 to vector<128x32xf32>
      %30 = arith.maximumf %28, %29 : vector<128x32xf32>
      %31 = arith.truncf %30 : vector<128x32xf32> to vector<128x32xbf16>
      %c0_16 = arith.constant 0 : index
      %c0_17 = arith.constant 0 : index
      %32 = vector.load %arg6[%c0_16, %c0_17] : memref<96x32xbf16, #tpu.memory_space<vmem>>, vector<32x32xbf16>
      %cst_18 = arith.constant dense<0.000000e+00> : vector<128x32xf32>
      %33 = tpu.matmul %31, %32, %cst_18 {dimension_numbers = #tpu.dot_dimension_numbers<[1], [0], [0], [1], [0, 0, 1, 1], [], []>} : vector<128x32xbf16>, vector<32x32xbf16>, vector<128x32xf32> -> vector<128x32xf32>
      %c1 = arith.constant 1 : index
      %c0_19 = arith.constant 0 : index
      %34 = vector.load %arg9[%c1, %c0_19] : memref<6x96xf32, #tpu.memory_space<vmem>>, vector<1x32xf32>
      %35 = vector.broadcast %34 : vector<1x32xf32> to vector<128x32xf32>
      %36 = arith.addf %33, %35 : vector<128x32xf32>
      %cst_20 = arith.constant 0.000000e+00 : f32
      %37 = vector.broadcast %cst_20 : f32 to vector<128x32xf32>
      %38 = arith.maximumf %36, %37 : vector<128x32xf32>
      %39 = arith.truncf %38 : vector<128x32xf32> to vector<128x32xbf16>
      %40 = arith.index_cast %1 : i32 to index
      %c0_21 = arith.constant 0 : index
      %41 = vector.load %arg11[%40, %c0_21] : memref<256x32xbf16, #tpu.memory_space<vmem>>, vector<128x32xbf16>
      tpu.vector_store %arg11[%40, %c0_21], %39 {strides = array<i32>} : memref<256x32xbf16, #tpu.memory_space<vmem>>, vector<128x32xbf16>,
      %c0_22 = arith.constant 0 : index
      %c0_23 = arith.constant 0 : index
      %42 = vector.load %arg12[%c0_22, %c0_23] : memref<2x32xf32, #tpu.memory_space<vmem>>, vector<2x32xf32>
      %c0_24 = arith.constant 0 : index
      %c0_25 = arith.constant 0 : index
      %43 = vector.load %arg4[%c0_24, %c0_25] : memref<2x128xbf16, #tpu.memory_space<vmem>>, vector<2x128xbf16>
      %cst_26 = arith.constant dense<0.000000e+00> : vector<2x32xf32>
      %44 = tpu.matmul %43, %39, %cst_26 {dimension_numbers = #tpu.dot_dimension_numbers<[1], [0], [0], [1], [0, 0, 1, 1], [], []>} : vector<2x128xbf16>, vector<128x32xbf16>, vector<2x32xf32> -> vector<2x32xf32>
      %45 = arith.addf %42, %44 : vector<2x32xf32>
      %c0_27 = arith.constant 0 : index
      %c0_28 = arith.constant 0 : index
      %46 = vector.load %arg12[%c0_27, %c0_28] : memref<2x32xf32, #tpu.memory_space<vmem>>, vector<2x32xf32>
      tpu.vector_store %arg12[%c0_27, %c0_28], %45 {strides = array<i32>} : memref<2x32xf32, #tpu.memory_space<vmem>>, vector<2x32xf32>,
    } else {
    }
    %c1_i32 = arith.constant 1 : i32
    %10 = arith.cmpi eq, %arg0, %c1_i32 : i32
    %11 = arith.extui %10 : i1 to i32
    %c0_i32_4 = arith.constant 0 : i32
    %12 = arith.cmpi ne, %11, %c0_i32_4 : i32
    scf.if %12 {
      %18 = arith.index_cast %1 : i32 to index
      %c0 = arith.constant 0 : index
      %19 = vector.load %arg3[%18, %c0] : memref<256x256xi8, #tpu.memory_space<vmem>>, vector<128x256xi8>
      %20 = arith.sitofp %19 : vector<128x256xi8> to vector<128x256xbf16>
      %c0_8 = arith.constant 0 : index
      %c0_9 = arith.constant 0 : index
      %21 = vector.load %arg11[%c0_8, %c0_9] : memref<256x32xbf16, #tpu.memory_space<vmem>>, vector<256x32xbf16>
      %cst = arith.constant dense<0.000000e+00> : vector<128x32xf32>
      %22 = tpu.matmul %20, %21, %cst {dimension_numbers = #tpu.dot_dimension_numbers<[1], [0], [0], [1], [0, 0, 1, 1], [], []>} : vector<128x256xbf16>, vector<256x32xbf16>, vector<128x32xf32> -> vector<128x32xf32>
      %23 = arith.truncf %22 : vector<128x32xf32> to vector<128x32xbf16>
      %c32 = arith.constant 32 : index
      %c0_10 = arith.constant 0 : index
      %24 = vector.load %arg6[%c32, %c0_10] : memref<96x32xbf16, #tpu.memory_space<vmem>>, vector<32x32xbf16>
      %cst_11 = arith.constant dense<0.000000e+00> : vector<128x32xf32>
      %25 = tpu.matmul %23, %24, %cst_11 {dimension_numbers = #tpu.dot_dimension_numbers<[1], [0], [0], [1], [0, 0, 1, 1], [], []>} : vector<128x32xbf16>, vector<32x32xbf16>, vector<128x32xf32> -> vector<128x32xf32>
      %c2 = arith.constant 2 : index
      %c0_12 = arith.constant 0 : index
      %26 = vector.load %arg9[%c2, %c0_12] : memref<6x96xf32, #tpu.memory_space<vmem>>, vector<1x32xf32>
      %27 = vector.broadcast %26 : vector<1x32xf32> to vector<128x32xf32>
      %28 = arith.addf %25, %27 : vector<128x32xf32>
      %cst_13 = arith.constant 0.000000e+00 : f32
      %29 = vector.broadcast %cst_13 : f32 to vector<128x32xf32>
      %30 = arith.maximumf %28, %29 : vector<128x32xf32>
      %31 = arith.truncf %30 : vector<128x32xf32> to vector<128x32xbf16>
      %c64 = arith.constant 64 : index
      %c0_14 = arith.constant 0 : index
      %32 = vector.load %arg6[%c64, %c0_14] : memref<96x32xbf16, #tpu.memory_space<vmem>>, vector<32x32xbf16>
      %cst_15 = arith.constant dense<0.000000e+00> : vector<128x32xf32>
      %33 = tpu.matmul %31, %32, %cst_15 {dimension_numbers = #tpu.dot_dimension_numbers<[1], [0], [0], [1], [0, 0, 1, 1], [], []>} : vector<128x32xbf16>, vector<32x32xbf16>, vector<128x32xf32> -> vector<128x32xf32>
      %c3 = arith.constant 3 : index
      %c0_16 = arith.constant 0 : index
      %34 = vector.load %arg9[%c3, %c0_16] : memref<6x96xf32, #tpu.memory_space<vmem>>, vector<1x32xf32>
      %35 = vector.broadcast %34 : vector<1x32xf32> to vector<128x32xf32>
      %36 = arith.addf %33, %35 : vector<128x32xf32>
      %cst_17 = arith.constant 0.000000e+00 : f32
      %37 = vector.broadcast %cst_17 : f32 to vector<128x32xf32>
      %38 = arith.maximumf %36, %37 : vector<128x32xf32>
      %c0_18 = arith.constant 0 : index
      %c0_19 = arith.constant 0 : index
      %39 = vector.load %arg13[%c0_18, %c0_19] : memref<2x32xf32, #tpu.memory_space<vmem>>, vector<2x32xf32>
      %c0_20 = arith.constant 0 : index
      %c0_21 = arith.constant 0 : index
      %40 = vector.load %arg4[%c0_20, %c0_21] : memref<2x128xbf16, #tpu.memory_space<vmem>>, vector<2x128xbf16>
      %41 = arith.truncf %38 : vector<128x32xf32> to vector<128x32xbf16>
      %cst_22 = arith.constant dense<0.000000e+00> : vector<2x32xf32>
      %42 = tpu.matmul %40, %41, %cst_22 {dimension_numbers = #tpu.dot_dimension_numbers<[1], [0], [0], [1], [0, 0, 1, 1], [], []>} : vector<2x128xbf16>, vector<128x32xbf16>, vector<2x32xf32> -> vector<2x32xf32>
      %43 = arith.addf %39, %42 : vector<2x32xf32>
      %c0_23 = arith.constant 0 : index
      %c0_24 = arith.constant 0 : index
      %44 = vector.load %arg13[%c0_23, %c0_24] : memref<2x32xf32, #tpu.memory_space<vmem>>, vector<2x32xf32>
      tpu.vector_store %arg13[%c0_23, %c0_24], %43 {strides = array<i32>} : memref<2x32xf32, #tpu.memory_space<vmem>>, vector<2x32xf32>,
    } else {
    }
    %c1_i32_5 = arith.constant 1 : i32
    %13 = arith.cmpi eq, %arg0, %c1_i32_5 : i32
    %c1_i32_6 = arith.constant 1 : i32
    %14 = arith.cmpi eq, %arg1, %c1_i32_6 : i32
    %15 = arith.andi %13, %14 : i1
    %16 = arith.extui %15 : i1 to i32
    %c0_i32_7 = arith.constant 0 : i32
    %17 = arith.cmpi ne, %16, %c0_i32_7 : i32
    scf.if %17 {
      %c0 = arith.constant 0 : index
      %c0_8 = arith.constant 0 : index
      %18 = vector.load %arg12[%c0, %c0_8] : memref<2x32xf32, #tpu.memory_space<vmem>>, vector<2x32xf32>
      %19 = arith.truncf %18 : vector<2x32xf32> to vector<2x32xbf16>
      %c0_9 = arith.constant 0 : index
      %c0_10 = arith.constant 0 : index
      %20 = vector.load %arg13[%c0_9, %c0_10] : memref<2x32xf32, #tpu.memory_space<vmem>>, vector<2x32xf32>
      %21 = arith.truncf %20 : vector<2x32xf32> to vector<2x32xbf16>
      %c0_11 = arith.constant 0 : index
      %c0_12 = arith.constant 0 : index
      %22 = vector.load %arg7[%c0_11, %c0_12] : memref<64x96xbf16, #tpu.memory_space<vmem>>, vector<32x96xbf16>
      %cst = arith.constant dense<0.000000e+00> : vector<2x96xf32>
      %23 = tpu.matmul %19, %22, %cst {dimension_numbers = #tpu.dot_dimension_numbers<[1], [0], [0], [1], [0, 0, 1, 1], [], []>} : vector<2x32xbf16>, vector<32x96xbf16>, vector<2x96xf32> -> vector<2x96xf32>
      %c32 = arith.constant 32 : index
      %c0_13 = arith.constant 0 : index
      %24 = vector.load %arg7[%c32, %c0_13] : memref<64x96xbf16, #tpu.memory_space<vmem>>, vector<32x96xbf16>
      %cst_14 = arith.constant dense<0.000000e+00> : vector<2x96xf32>
      %25 = tpu.matmul %21, %24, %cst_14 {dimension_numbers = #tpu.dot_dimension_numbers<[1], [0], [0], [1], [0, 0, 1, 1], [], []>} : vector<2x32xbf16>, vector<32x96xbf16>, vector<2x96xf32> -> vector<2x96xf32>
      %26 = arith.addf %23, %25 : vector<2x96xf32>
      %c4 = arith.constant 4 : index
      %c0_15 = arith.constant 0 : index
      %27 = vector.load %arg9[%c4, %c0_15] : memref<6x96xf32, #tpu.memory_space<vmem>>, vector<1x96xf32>
      %28 = vector.broadcast %27 : vector<1x96xf32> to vector<2x96xf32>
      %29 = arith.addf %26, %28 : vector<2x96xf32>
      %cst_16 = arith.constant 0.000000e+00 : f32
      %30 = vector.broadcast %cst_16 : f32 to vector<2x96xf32>
      %31 = arith.maximumf %29, %30 : vector<2x96xf32>
      %32 = arith.truncf %31 : vector<2x96xf32> to vector<2x96xbf16>
      %c0_17 = arith.constant 0 : index
      %c0_18 = arith.constant 0 : index
      %33 = vector.load %arg8[%c0_17, %c0_18] : memref<96x4xbf16, #tpu.memory_space<vmem>>, vector<96x4xbf16>
      %cst_19 = arith.constant dense<0.000000e+00> : vector<2x4xf32>
      %34 = tpu.matmul %32, %33, %cst_19 {dimension_numbers = #tpu.dot_dimension_numbers<[1], [0], [0], [1], [0, 0, 1, 1], [], []>} : vector<2x96xbf16>, vector<96x4xbf16>, vector<2x4xf32> -> vector<2x4xf32>
      %c5 = arith.constant 5 : index
      %c0_20 = arith.constant 0 : index
      %35 = vector.load %arg9[%c5, %c0_20] : memref<6x96xf32, #tpu.memory_space<vmem>>, vector<1x4xf32>
      %36 = vector.broadcast %35 : vector<1x4xf32> to vector<2x4xf32>
      %37 = arith.addf %34, %36 : vector<2x4xf32>
      %cst_21 = arith.constant dense<0xFF800000> : vector<2xf32>
      %38 = vector.multi_reduction <maximumf>, %37, %cst_21 [1] : vector<2x4xf32> to vector<2xf32>
      %39 = vector.shape_cast %38 : vector<2xf32> to vector<2x1xf32>
      %40 = vector.broadcast %39 : vector<2x1xf32> to vector<2x4xf32>
      %41 = arith.subf %37, %40 : vector<2x4xf32>
      %42 = math.exp %41 : vector<2x4xf32>
      %cst_22 = arith.constant dense<0.000000e+00> : vector<2xf32>
      %43 = vector.multi_reduction <add>, %42, %cst_22 [1] : vector<2x4xf32> to vector<2xf32>
      %44 = vector.shape_cast %43 : vector<2xf32> to vector<2x1xf32>
      %45 = math.log %44 : vector<2x1xf32>
      %46 = vector.broadcast %45 : vector<2x1xf32> to vector<2x4xf32>
      %47 = arith.subf %41, %46 : vector<2x4xf32>
      %c0_23 = arith.constant 0 : index
      %c0_24 = arith.constant 0 : index
      %48 = vector.load %arg10[%c0_23, %c0_24] : memref<2x4xf32, #tpu.memory_space<vmem>>, vector<2x4xf32>
      tpu.vector_store %arg10[%c0_23, %c0_24], %47 {strides = array<i32>} : memref<2x4xf32, #tpu.memory_space<vmem>>, vector<2x4xf32>,
    } else {
    }
    return
  }
  func.func @transform_0(%arg0: i32, %arg1: i32) -> (i32, i32) {
    %c0_i32 = arith.constant 0 : i32
    %c0_i32_0 = arith.constant 0 : i32
    %c0_i32_1 = arith.constant 0 : i32
    return %c0_i32, %c0_i32_0 : i32, i32
  }
  func.func @transform_1(%arg0: i32, %arg1: i32) -> (i32, i32) {
    %c0_i32 = arith.constant 0 : i32
    %c0_i32_0 = arith.constant 0 : i32
    %c0_i32_1 = arith.constant 0 : i32
    return %c0_i32, %c0_i32_0 : i32, i32
  }
  func.func @transform_2(%arg0: i32, %arg1: i32) -> (i32, i32) {
    %c0_i32 = arith.constant 0 : i32
    %c0_i32_0 = arith.constant 0 : i32
    return %c0_i32, %arg1 : i32, i32
  }
  func.func @transform_3(%arg0: i32, %arg1: i32) -> (i32, i32) {
    %c0_i32 = arith.constant 0 : i32
    %c0_i32_0 = arith.constant 0 : i32
    %c0_i32_1 = arith.constant 0 : i32
    return %c0_i32, %c0_i32_0 : i32, i32
  }
  func.func @transform_4(%arg0: i32, %arg1: i32) -> (i32, i32) {
    %c0_i32 = arith.constant 0 : i32
    %c0_i32_0 = arith.constant 0 : i32
    %c0_i32_1 = arith.constant 0 : i32
    return %c0_i32, %c0_i32_0 : i32, i32
  }
  func.func @transform_5(%arg0: i32, %arg1: i32) -> (i32, i32) {
    %c0_i32 = arith.constant 0 : i32
    %c0_i32_0 = arith.constant 0 : i32
    %c0_i32_1 = arith.constant 0 : i32
    return %c0_i32, %c0_i32_0 : i32, i32
  }
  func.func @transform_6(%arg0: i32, %arg1: i32) -> (i32, i32) {
    %c0_i32 = arith.constant 0 : i32
    %c0_i32_0 = arith.constant 0 : i32
    %c0_i32_1 = arith.constant 0 : i32
    return %c0_i32, %c0_i32_0 : i32, i32
  }
  func.func @transform_7(%arg0: i32, %arg1: i32) -> (i32, i32) {
    %c0_i32 = arith.constant 0 : i32
    %c0_i32_0 = arith.constant 0 : i32
    %c0_i32_1 = arith.constant 0 : i32
    return %c0_i32, %c0_i32_0 : i32, i32
  }
  func.func @transform_8(%arg0: i32, %arg1: i32) -> (i32, i32) {
    %c0_i32 = arith.constant 0 : i32
    %c0_i32_0 = arith.constant 0 : i32
    %c0_i32_1 = arith.constant 0 : i32
    return %c0_i32, %c0_i32_0 : i32, i32
  }
}

</mosaic_0001>

<bundles_post_ra>
// kernel: tpu_custom_call.1
= control target key start
LH: loop header
LB: loop body
LE: loop exit
PB: predicated region body
PF: predicated region fallthrough
CT: control target
= control target key end

     0   :  { %13 = vsyncpa [#allocation6], 0  ;;  %s2686_s27 = smov 0   ;;  %s2688_s28 = smov 0   ;;  %s3063_s0 = inlined_call_operand.vmem [shape: bf16[256,8], index: 0, kind: input, shape index: {}]   ;;  %s3064_s1 = inlined_call_operand.vmem [shape: s8[256,256], index: 1, kind: input, shape index: {}]   ;;  %s3065_s2 = inlined_call_operand.vmem [shape: bf16[2,256], index: 2, kind: input, shape index: {}]   ;;  %s3066_s3 = inlined_call_operand.vmem [shape: bf16[8,32], index: 3, kind: input, shape index: {}]   ;;  %s3067_s4 = inlined_call_operand.vmem [shape: bf16[96,32], index: 4, kind: input, shape index: {}]   ;;  %s3068_s5 = inlined_call_operand.vmem [shape: bf16[64,96], index: 5, kind: input, shape index: {}]   ;;  %s3069_s6 = inlined_call_operand.vmem [shape: bf16[96,4], index: 6, kind: input, shape index: {}]   ;;  %s3070_s7 = inlined_call_operand.vmem [shape: f32[6,96], index: 7, kind: input, shape index: {}]   ;;  %s3071_s8 = inlined_call_operand.hbm [shape: f32[2,4], index: 8, kind: output, shape index: {}]  }
   0x1   :  { %s2690_s29 = smov 0   ;;  %s2692_s30 = smov 0  }
   0x2   :  { %s2694_s9 = smov 0  }
   0x3 LB: > { %s1971_s10 = sadd.s32 4294967295, %s2631_s9   ;;  %s28_s11 = sadd.s32 1, %s2623_s29  ;;  %s2631_s9 = sphi %s2694_s9, %s19_s9   ;;  %s2627_s30 = sphi %s2692_s30, %s3076_s30   ;;  %s2623_s29 = sphi %s2690_s29, %s3075_s29   ;;  %s2619_s28 = sphi %s2688_s28, %s3074_s28   ;;  %s2615_s27 = sphi %s2686_s27, %s3073_s27  }
   0x4   : > { %p29_p0 = scmp.ge.s32.totalorder %s28_s11, 2  ;;  %s31_s12 = sadd.s32 1, %s2627_s30 }
   0x5   : > { %p1974_p1 = scmp.ge.s32.totalorder %s2631_s9, 1  ;;  %p268_p2 = scmp.lt.s32.totalorder %s2631_s9, 5 }
   0x6   : > { %s3078_s11 = smov (%p29_p0, %s28_s11), 0  ;;  %s3080_s12 = smov (!%p29_p0, %s31_s12), %s2627_s30 }
   0x7   : > { %p269_p3 = pnand %p1974_p1, %p268_p2  ;;  %p33_p4 = scmp.ge.s32.totalorder %s3080_s12, 2 }
   0x8   : > { %p295_p5 = scmp.lt.s32.totalorder (!%p269_p3), %s2615_s27, 1  ;;  %s2723_s13 = sshll.u32 (!%p269_p3), %s2615_s27, 7 }
   0x9   : > { %s3082_s12 = smov (%p33_p4, %s3080_s12), 0  ;;  %272 = sbr.rel (%p269_p3) target bundleno = 2650 (0xa5a), region = 52 }
   0xa   : > { %p300_p6 = scmp.eq.s32.totalorder (!%p269_p3), %s2619_s28, 0  ;;  %p301_p7 = scmp.eq.s32.totalorder (!%p269_p3), %s2615_s27, 0 }
   0xc   : > { %p302_p8 = pnand (!%p269_p3), %p301_p7, %p300_p6 }
   0xe   : > { %s296_s14 = scalar_select %p295_p5, %s2615_s27, 1 }
   0xf   : > { %305 = sbr.rel (%p302_p8) target bundleno = 22 (0x16), region = 56 }
  0x10   : > { %s2731_s17 = scalar_lea.vmem %s3065_s2, %s296_s14 }
  0x14   : > { %vm306_vm0 = vcmask 254976   ;;  %v2633_v0 = vmov 0.0  }
  0x15   : > { %307 = vst.msk [vmem:[#allocation3] sm:$0x3] %vm306_vm0, %v2633_v0  ;;  %308 = vst.msk [vmem:[#allocation4] sm:$0x3] %vm306_vm0, %v2633_v0 }
  0x16 PF: > { %p1976_p9 = scmp.ne.s32.totalorder %s2619_s28, 0 }
  0x17   : > { %s312_s18 = sshra.s32 (!%p1976_p9), %s2723_s13, 5  ;;  %s953_s19 = sshra.s32 (!%p1976_p9), %s2723_s13, 3 }
  0x18   : > { %311 = sbr.rel (%p1976_p9) target bundleno = 960 (0x3c0), region = 60  ;;  %s2092_s21 = sshll.u32 (!%p1976_p9), %s312_s18, 4 }
  0x19   : > { %s2765_s15 = scalar_lea.vmem (!%p1976_p9), %s3064_s1, %s2092_s21  ;;  %s2031_s18 = sshll.u32 (!%p1976_p9), %s953_s19, 2 }
  0x1a   : > { %s2841_s20 = scalar_lea.vmem (!%p1976_p9), [#allocation2], %s2031_s18 }
  0x1d   : > { %v2513_v1 = vld [vmem:[%s3063_s0 + $0x78] sm:$0xff]   ;;  %v2515_v3 = vld [vmem:[%s3063_s0 + $0x70] sm:$0xff]   ;;  %v2517_v5 = vld [vmem:[%s3063_s0 + $0x68] sm:$0xff]   ;;  %vm605_vm1 = vcmask 1043456   ;;  %vm580_vm2 = vcmask 64512   ;;  %vm751_vm3 = vcmask 261120  }
  0x1e   : > { %v2514_v2 = vld [vmem:[%s3063_s0 + $0x38] sm:$0xff]   ;;  %2110 = vmatprep.subr.bf16.mxu0 %v2513_v1  ;;  %v2516_v4 = vld [vmem:[%s3063_s0 + $0x30] sm:$0xff]   ;;  %v2518_v6 = vld [vmem:[%s3063_s0 + $0x28] sm:$0xff]   ;;  %vm2635_vm4 = vmmov 0   ;;  %vm957_vm5 = vcmask 257024   ;;  %vm1017_vm6 = vcmask 254976  }
  0x1f   : > { %2111 = vmatpush3.bf16.msra.mxu0 %v2514_v2  ;;  %v2519_v7 = vld [vmem:[%s3063_s0 + $0x60] sm:$0xff]   ;;  %v2521_v9 = vld [vmem:[%s3063_s0 + $0x58] sm:$0xff]   ;;  %v2523_v11 = vld [vmem:[%s3063_s0 + $0x50] sm:$0xff]  }
  0x20   : > { %2112 = vmatprep.subr.bf16.mxu0 %v2515_v3  ;;  %v2520_v8 = vld [vmem:[%s3063_s0 + $0x20] sm:$0xff]   ;;  %v2522_v10 = vld [vmem:[%s3063_s0 + $0x18] sm:$0xff]   ;;  %v318_v12 = vld [vmem:[%s2765_s15 + $0x8] sm:$0xff] }
  0x21   : > { %v326_v13 = vunpack.c.l.s8.bf16 %v318_v12  ;;  %v2524_v14 = vld [vmem:[%s3063_s0 + $0x10] sm:$0xff]   ;;  %v2525_v15 = vld [vmem:[%s3063_s0 + $0x48] sm:$0xff]   ;;  %v2527_v17 = vld [vmem:[%s3063_s0 + $0x40] sm:$0xff]   ;;  %v328_v21 = vunpack.c.h.s8.bf16 %v318_v12 }
  0x22   : > { %v2526_v16 = vld [vmem:[%s3063_s0 + $0x8] sm:$0xff]   ;;  %v2528_v18 = vld [vmem:[%s3063_s0] sm:$0xff]   ;;  %v320_v22 = vld [vmem:[%s2765_s15 + $0x18] sm:$0xff] }
  0x23   : > { %2113 = vmatpush3.bf16.msra.mxu0 %v2516_v4  ;;  %501 = vmatprep.mubr.bf16.mxu0 %v326_v13  ;;  %v317_v19 = vld [vmem:[%s2765_s15] sm:$0xff]  ;;  %v330_v24 = vunpack.c.l.s8.bf16 %v320_v22  ;;  %v319_v25 = vld [vmem:[%s2765_s15 + $0x10] sm:$0xff]  ;;  %v332_v27 = vunpack.c.h.s8.bf16 %v320_v22  ;;  %v322_v28 = vld [vmem:[%s2765_s15 + $0x28] sm:$0xff] }
  0x24   : > { %2114 = vmatprep.subr.bf16.mxu0 %v2517_v5  ;;  %v325_v20 = vunpack.c.l.s8.bf16 %v317_v19  ;;  %v327_v23 = vunpack.c.h.s8.bf16 %v317_v19  ;;  %v329_v26 = vunpack.c.l.s8.bf16 %v319_v25  ;;  %v331_v29 = vunpack.c.h.s8.bf16 %v319_v25  ;;  %v321_v31 = vld [vmem:[%s2765_s15 + $0x20] sm:$0xff]  ;;  %v324_v34 = vld [vmem:[%s2765_s15 + $0x38] sm:$0xff]  ;;  %v323_v37 = vld [vmem:[%s2765_s15 + $0x30] sm:$0xff] }
  0x25   : > { %v334_v30 = vunpack.c.l.s8.bf16 %v322_v28  ;;  %v333_v32 = vunpack.c.l.s8.bf16 %v321_v31  ;;  %v336_v33 = vunpack.c.h.s8.bf16 %v322_v28  ;;  %v335_v35 = vunpack.c.h.s8.bf16 %v321_v31  ;;  %v574_v41 = vld [vmem:[%s3066_s3] sm:$0xf] }
  0x26   : > { %v338_v36 = vunpack.c.l.s8.bf16 %v324_v34  ;;  %v337_v38 = vunpack.c.l.s8.bf16 %v323_v37  ;;  %v340_v39 = vunpack.c.h.s8.bf16 %v324_v34  ;;  %v339_v40 = vunpack.c.h.s8.bf16 %v323_v37  ;;  %2458 = vmatprep.subr.msk.bf16.mxu1 %vm605_vm1, %v574_v41 }
  0x27   : > { %2115 = vmatpush3.bf16.msra.mxu0 %v2518_v6  ;;  %v607_v42 = vsel %vm605_vm1, %v574_v41, 0 }
  0x28   : > { %2116 = vmatprep.subr.bf16.mxu0 %v2519_v7  ;;  %2309 = vmatpush3.bf16.msra.mxu1 %v607_v42 }
  0x2b   : > { %2117 = vmatpush3.bf16.msra.mxu0 %v2520_v8 }
  0x2c   : > { %2118 = vmatprep.subr.bf16.mxu0 %v2521_v9 }
  0x2f   : > { %2119 = vmatpush3.bf16.msra.mxu0 %v2522_v10 }
  0x30   : > { %2120 = vmatprep.subr.bf16.mxu0 %v2523_v11 }
  0x33   : > { %2121 = vmatpush3.bf16.msra.mxu0 %v2524_v14 }
  0x34   : > { %2122 = vmatprep.subr.bf16.mxu0 %v2525_v15 }
  0x37   : > { %2123 = vmatpush3.bf16.msra.mxu0 %v2526_v16 }
  0x38   : > { %2124 = vmatprep.subr.bf16.mxu0 %v2527_v17 }
  0x3b   : > { %2125 = vmatpush3.bf16.msra.mxu0 %v2528_v18 }
  0x3e   : > { %502 = vmatmul.mubr.bf16.vlgmr.msra.gmra.mxu0 %v325_v20 }
  0x3f   : > { %509 = vmatprep.mubr.bf16.mxu0 %v328_v21 }
  0x46   : > { %510 = vmatmul.mubr.bf16.gmra.mxu0 %v327_v23 }
  0x47   : > { %517 = vmatprep.mubr.bf16.mxu0 %v330_v24 }
  0x4e   : > { %518 = vmatmul.mubr.bf16.gmra.mxu0 %v329_v26 }
  0x4f   : > { %525 = vmatprep.mubr.bf16.mxu0 %v332_v27 }
  0x56   : > { %526 = vmatmul.mubr.bf16.gmra.mxu0 %v331_v29 }
  0x57   : > { %533 = vmatprep.mubr.bf16.mxu0 %v334_v30 }
  0x5e   : > { %534 = vmatmul.mubr.bf16.gmra.mxu0 %v333_v32 }
  0x5f   : > { %541 = vmatprep.mubr.bf16.mxu0 %v336_v33 }
  0x66   : > { %542 = vmatmul.mubr.bf16.gmra.mxu0 %v335_v35  ;;  %v2529_v35 = vld [vmem:[%s3067_s4 + $0x8] sm:$0xff]  }
  0x67   : > { %549 = vmatprep.mubr.bf16.mxu0 %v338_v36  ;;  %2326 = vmatprep.subr.bf16.mxu1 %v2529_v35  ;;  %v2530_v36 = vld [vmem:[%s3067_s4] sm:$0xff]  }
  0x6e   : > { %550 = vmatmul.mubr.bf16.gmra.mxu0 %v337_v38 }
  0x6f   : > { %557 = vmatprep.mubr.bf16.mxu0 %v340_v39  ;;  %v1995_v39 = vld [vmem:[%s3070_s7] ss:$0 sm:$0xff] }
  0x76   : > { %558 = vmatmul.mubr.bf16.gmra.mxu0 %v339_v40 }
  0xfe   : > { %v2126_v43 = vpop.f32.mrf.mxu0 }
 0x100   : > { %v2127_v44 = vpop.f32.mrf.mxu0 }
 0x101   : > { %v2128_v47 = vadd.f32 %v2127_v44, %v2126_v43 }
 0x102   : > { %v2129_v45 = vpop.f32.mrf.mxu0 }
 0x104   : > { %v2130_v46 = vpop.f32.mrf.mxu0 }
 0x105   : > { %v2131_v48 = vadd.f32 %v2130_v46, %v2129_v45 }
 0x106   : > { %v2132_v49 = vpop.f32.mrf.mxu0 }
 0x107   : > { %v566_v50 = vpack.c.bf16 %v2131_v48, %v2128_v47 }
 0x108   : > { %v2133_v51 = vpop.f32.mrf.mxu0 }
 0x109   : > { %2310 = vmatprep.mubr.msk.bf16.mxu1 %vm580_vm2, %v566_v50  ;;  %v2134_v54 = vadd.f32 %v2133_v51, %v2132_v49 }
 0x10a   : > { %v2135_v52 = vpop.f32.mrf.mxu0 }
 0x10c   : > { %v2136_v53 = vpop.f32.mrf.mxu0 }
 0x10d   : > { %v2137_v55 = vadd.f32 %v2136_v53, %v2135_v52 }
 0x10e   : > { %v2138_v56 = vpop.f32.mrf.mxu0 }
 0x10f   : > { %v567_v57 = vpack.c.bf16 %v2137_v55, %v2134_v54 }
 0x110   : > { %v2139_v58 = vpop.f32.mrf.mxu0 }
 0x111   : > { %2311 = vmatmul.mubr.msk.bf16.vlgmr.msra.gmra.mxu1 %vm580_vm2, %v567_v57  ;;  %v2140_v61 = vadd.f32 %v2139_v58, %v2138_v56 }
 0x112   : > { %v2141_v59 = vpop.f32.mrf.mxu0  ;;  %2327 = vmatpush3.bf16.msra.mxu1 %v2529_v35 }
 0x113   : > { %2328 = vmatprep.subr.bf16.mxu1 %v2530_v36 }
 0x114   : > { %v2142_v60 = vpop.f32.mrf.mxu0 }
 0x115   : > { %v2143_v62 = vadd.f32 %v2142_v60, %v2141_v59 }
 0x116   : > { %v2144_v63 = vpop.f32.mrf.mxu0  ;;  %2329 = vmatpush3.bf16.msra.mxu1 %v2530_v36 }
 0x117   : > { %v568_v0 = vpack.c.bf16 %v2143_v62, %v2140_v61 }
 0x118   : > { %v2145_v1 = vpop.f32.mrf.mxu0 }
 0x119   : > { %2314 = vmatprep.mubr.msk.bf16.mxu1 %vm580_vm2, %v568_v0  ;;  %v2146_v4 = vadd.f32 %v2145_v1, %v2144_v63 }
 0x11a   : > { %v2147_v2 = vpop.f32.mrf.mxu0 }
 0x11c   : > { %v2148_v3 = vpop.f32.mrf.mxu0 }
 0x11d   : > { %v2149_v5 = vadd.f32 %v2148_v3, %v2147_v2 }
 0x11e   : > { %v2150_v6 = vpop.f32.mrf.mxu0 }
 0x11f   : > { %v569_v7 = vpack.c.bf16 %v2149_v5, %v2146_v4 }
 0x120   : > { %v2151_v8 = vpop.f32.mrf.mxu0 }
 0x121   : > { %2315 = vmatmul.mubr.msk.bf16.gmra.mxu1 %vm580_vm2, %v569_v7  ;;  %v2152_v11 = vadd.f32 %v2151_v8, %v2150_v6 }
 0x122   : > { %v2153_v9 = vpop.f32.mrf.mxu0 }
 0x124   : > { %v2154_v10 = vpop.f32.mrf.mxu0 }
 0x125   : > { %v2155_v12 = vadd.f32 %v2154_v10, %v2153_v9 }
 0x126   : > { %v2156_v13 = vpop.f32.mrf.mxu0 }
 0x127   : > { %v570_v14 = vpack.c.bf16 %v2155_v12, %v2152_v11 }
 0x128   : > { %v2157_v15 = vpop.f32.mrf.mxu0 }
 0x129   : > { %2318 = vmatprep.mubr.msk.bf16.mxu1 %vm580_vm2, %v570_v14  ;;  %v2158_v18 = vadd.f32 %v2157_v15, %v2156_v13 }
 0x12a   : > { %v2159_v16 = vpop.f32.mrf.mxu0 }
 0x12c   : > { %v2160_v17 = vpop.f32.mrf.mxu0 }
 0x12d   : > { %v2161_v19 = vadd.f32 %v2160_v17, %v2159_v16 }
 0x12e   : > { %v2162_v20 = vpop.f32.mrf.mxu0 }
 0x12f   : > { %v571_v21 = vpack.c.bf16 %v2161_v19, %v2158_v18 }
 0x130   : > { %v2163_v22 = vpop.f32.mrf.mxu0 }
 0x131   : > { %2319 = vmatmul.mubr.msk.bf16.gmra.mxu1 %vm580_vm2, %v571_v21  ;;  %v2164_v25 = vadd.f32 %v2163_v22, %v2162_v20 }
 0x132   : > { %v2165_v23 = vpop.f32.mrf.mxu0 }
 0x134   : > { %v2166_v24 = vpop.f32.mrf.mxu0 }
 0x135   : > { %v2167_v26 = vadd.f32 %v2166_v24, %v2165_v23 }
 0x136   : > { %v2168_v27 = vpop.f32.mrf.mxu0 }
 0x137   : > { %v572_v28 = vpack.c.bf16 %v2167_v26, %v2164_v25 }
 0x138   : > { %v2169_v29 = vpop.f32.mrf.mxu0 }
 0x139   : > { %2322 = vmatprep.mubr.msk.bf16.mxu1 %vm580_vm2, %v572_v28  ;;  %v2170_v32 = vadd.f32 %v2169_v29, %v2168_v27 }
 0x13a   : > { %v2171_v30 = vpop.f32.mrf.mxu0 }
 0x13c   : > { %v2172_v31 = vpop.f32.mrf.mxu0 }
 0x13d   : > { %v2173_v33 = vadd.f32 %v2172_v31, %v2171_v30  ;;  %v2634_v30 = vmov 0.0   ;;  %v2829_v31 = vld [vmem:[%s3070_s7 + $0x1] ss:$0 sm:$0xff] }
 0x13e   : > { %2346 = vmatprep.subr.bf16.mxu1 %v2634_v30 }
 0x13f   : > { %v573_v34 = vpack.c.bf16 %v2173_v33, %v2170_v32 }
 0x141   : > { %2323 = vmatmul.mubr.msk.bf16.gmra.mxu1 %vm580_vm2, %v573_v34 }
 0x1d1   : > { %v2312_v37 = vpop.f32.mrf.mxu1 }
 0x1d2   : > { %v652_v43 = vadd.f32 %v2312_v37, %v1995_v39 }
 0x1d3   : > { %v643_v38 = vpop.f32.mrf.mxu1 }
 0x1d4   : > { %v644_v41 = vadd.f32 %v1995_v39, %v643_v38  ;;  %v708_v49 = vmax.f32 %v652_v43, 0.0 }
 0x1d5   : > { %v2313_v40 = vpop.f32.mrf.mxu1 }
 0x1d6   : > { %v655_v42 = vadd.f32 %v2313_v40, %v1995_v39  ;;  %v706_v47 = vmax.f32 %v644_v41, 0.0 }
 0x1d7   : > { %v646_v44 = vpop.f32.mrf.mxu1 }
 0x1d8   : > { %v647_v45 = vadd.f32 %v1995_v39, %v646_v44  ;;  %v709_v46 = vmax.f32 %v655_v42, 0.0 }
 0x1da   : > { %v707_v48 = vmax.f32 %v647_v45, 0.0  ;;  %v723_v51 = vpack.c.bf16 %v709_v46, %v708_v49 }
 0x1dc   : > { %v722_v50 = vpack.c.bf16 %v707_v48, %v706_v47 }
 0x1de   : > { %2330 = vmatprep.mubr.msk.bf16.mxu1 %vm751_vm3, %v722_v50 }
 0x1df   : > { %2331 = vmatmul.mubr.msk.bf16.vlgmr.msra.gmra.mxu1 %vm751_vm3, %v723_v51 }
 0x1e1   : > { %v2316_v52 = vpop.f32.mrf.mxu1 }
 0x1e2   : > { %v668_v57 = vadd.f32 %v2316_v52, %v1995_v39 }
 0x1e3   : > { %v659_v53 = vpop.f32.mrf.mxu1 }
 0x1e4   : > { %v660_v55 = vadd.f32 %v1995_v39, %v659_v53  ;;  %v712_v63 = vmax.f32 %v668_v57, 0.0 }
 0x1e5   : > { %v2317_v54 = vpop.f32.mrf.mxu1 }
 0x1e6   : > { %v671_v56 = vadd.f32 %v2317_v54, %v1995_v39  ;;  %v710_v61 = vmax.f32 %v660_v55, 0.0 }
 0x1e7   : > { %v662_v58 = vpop.f32.mrf.mxu1 }
 0x1e8   : > { %v663_v59 = vadd.f32 %v1995_v39, %v662_v58  ;;  %v713_v60 = vmax.f32 %v671_v56, 0.0 }
 0x1ea   : > { %v711_v62 = vmax.f32 %v663_v59, 0.0  ;;  %v725_v1 = vpack.c.bf16 %v713_v60, %v712_v63 }
 0x1ec   : > { %v724_v0 = vpack.c.bf16 %v711_v62, %v710_v61 }
 0x1ee   : > { %2334 = vmatprep.mubr.msk.bf16.mxu1 %vm751_vm3, %v724_v0 }
 0x1ef   : > { %2335 = vmatmul.mubr.msk.bf16.gmra.mxu1 %vm751_vm3, %v725_v1 }
 0x1f1   : > { %v2320_v2 = vpop.f32.mrf.mxu1 }
 0x1f2   : > { %v684_v7 = vadd.f32 %v2320_v2, %v1995_v39 }
 0x1f3   : > { %v675_v3 = vpop.f32.mrf.mxu1 }
 0x1f4   : > { %v676_v5 = vadd.f32 %v1995_v39, %v675_v3  ;;  %v716_v13 = vmax.f32 %v684_v7, 0.0 }
 0x1f5   : > { %v2321_v4 = vpop.f32.mrf.mxu1 }
 0x1f6   : > { %v687_v6 = vadd.f32 %v2321_v4, %v1995_v39  ;;  %v714_v11 = vmax.f32 %v676_v5, 0.0 }
 0x1f7   : > { %v678_v8 = vpop.f32.mrf.mxu1 }
 0x1f8   : > { %v679_v9 = vadd.f32 %v1995_v39, %v678_v8  ;;  %v717_v10 = vmax.f32 %v687_v6, 0.0 }
 0x1fa   : > { %v715_v12 = vmax.f32 %v679_v9, 0.0  ;;  %v727_v15 = vpack.c.bf16 %v717_v10, %v716_v13 }
 0x1fc   : > { %v726_v14 = vpack.c.bf16 %v715_v12, %v714_v11 }
 0x1fe   : > { %2338 = vmatprep.mubr.msk.bf16.mxu1 %vm751_vm3, %v726_v14 }
 0x1ff   : > { %2339 = vmatmul.mubr.msk.bf16.gmra.mxu1 %vm751_vm3, %v727_v15 }
 0x201   : > { %v2324_v16 = vpop.f32.mrf.mxu1 }
 0x202   : > { %v700_v21 = vadd.f32 %v2324_v16, %v1995_v39 }
 0x203   : > { %v691_v17 = vpop.f32.mrf.mxu1 }
 0x204   : > { %v692_v19 = vadd.f32 %v1995_v39, %v691_v17  ;;  %v720_v27 = vmax.f32 %v700_v21, 0.0 }
 0x205   : > { %v2325_v18 = vpop.f32.mrf.mxu1 }
 0x206   : > { %v703_v20 = vadd.f32 %v2325_v18, %v1995_v39  ;;  %v718_v25 = vmax.f32 %v692_v19, 0.0 }
 0x207   : > { %v694_v22 = vpop.f32.mrf.mxu1 }
 0x208   : > { %v695_v23 = vadd.f32 %v1995_v39, %v694_v22  ;;  %v721_v24 = vmax.f32 %v703_v20, 0.0 }
 0x20a   : > { %v719_v26 = vmax.f32 %v695_v23, 0.0  ;;  %v729_v29 = vpack.c.bf16 %v721_v24, %v720_v27 }
 0x20c   : > { %v728_v28 = vpack.c.bf16 %v719_v26, %v718_v25 }
 0x20e   : > { %2342 = vmatprep.mubr.msk.bf16.mxu1 %vm751_vm3, %v728_v28 }
 0x20f   : > { %2343 = vmatmul.mubr.msk.bf16.gmra.mxu1 %vm751_vm3, %v729_v29 }
 0x210   : > { %2362 = vmatprep.mubr.msk.bf16.mxu1 %vm2635_vm4, %v2634_v30 }
 0x29f   : > { %v2332_v32 = vpop.f32.mrf.mxu1 }
 0x2a0   : > { %v819_v33 = vadd.f32 %v2332_v32, %v2829_v31 }
 0x2a1   : > { %v810_v34 = vpop.f32.mrf.mxu1 }
 0x2a2   : > { %v2833_v35 = vmax.f32 %v819_v33, 0.0  ;;  %v811_v36 = vadd.f32 %v2829_v31, %v810_v34 }
 0x2a3   : > { %v2333_v37 = vpop.f32.mrf.mxu1 }
 0x2a4   : > { %v2095_v38 = vpack.c.bf16 %v2833_v35, %v2833_v35  ;;  %v2838_v39 = vmax.f32 %v811_v36, 0.0  ;;  %v822_v40 = vadd.f32 %v2333_v37, %v2829_v31 }
 0x2a5   : > { %v813_v41 = vpop.f32.mrf.mxu1 }
 0x2a6   : > { %960 = vst.msk [vmem:[%s2841_s20 + $0x8] sm:$0xf] %vm957_vm5, %v2095_v38  ;;  %v2093_v42 = vpack.c.bf16 %v2838_v39, %v2838_v39  ;;  %v2847_v43 = vmax.f32 %v822_v40, 0.0  ;;  %v814_v44 = vadd.f32 %v2829_v31, %v813_v41 }
 0x2a8   : > { %958 = vst.msk [vmem:[%s2841_s20] sm:$0xf] %vm957_vm5, %v2093_v42  ;;  %v890_v45 = vpack.c.bf16 %v2847_v43, %v2833_v35  ;;  %v2096_v46 = vpack.c.bf16 %v2847_v43, %v2847_v43  ;;  %v2856_v47 = vmax.f32 %v814_v44, 0.0  ;;  %v975_v44 = vld [vmem:[%s2731_s17] sm:$0x1] }
 0x2aa   : > { %961 = vst.msk [vmem:[%s2841_s20 + $0xc] sm:$0xf] %vm957_vm5, %v2096_v46  ;;  %v889_v48 = vpack.c.bf16 %v2856_v47, %v2838_v39  ;;  %v2094_v49 = vpack.c.bf16 %v2856_v47, %v2856_v47  ;;  %v974_v46 = vld [vmem:[#allocation3] sm:$0x3] }
 0x2ac   : > { %959 = vst.msk [vmem:[%s2841_s20 + $0x4] sm:$0xf] %vm957_vm5, %v2094_v49 }
 0x2af   : > { %v2336_v50 = vpop.f32.mrf.mxu1 }
 0x2b0   : > { %v835_v51 = vadd.f32 %v2336_v50, %v2829_v31 }
 0x2b1   : > { %v826_v52 = vpop.f32.mrf.mxu1 }
 0x2b2   : > { %v2867_v53 = vmax.f32 %v835_v51, 0.0  ;;  %v827_v54 = vadd.f32 %v2829_v31, %v826_v52 }
 0x2b3   : > { %v2337_v55 = vpop.f32.mrf.mxu1 }
 0x2b4   : > { %v2099_v56 = vpack.c.bf16 %v2867_v53, %v2867_v53  ;;  %v2872_v57 = vmax.f32 %v827_v54, 0.0  ;;  %v838_v58 = vadd.f32 %v2337_v55, %v2829_v31 }
 0x2b5   : > { %v829_v59 = vpop.f32.mrf.mxu1 }
 0x2b6   : > { %964 = vst.msk [vmem:[%s2841_s20 + $0x18] sm:$0xf] %vm957_vm5, %v2099_v56  ;;  %v2097_v60 = vpack.c.bf16 %v2872_v57, %v2872_v57  ;;  %v880_v61 = vmax.f32 %v838_v58, 0.0  ;;  %v830_v62 = vadd.f32 %v2829_v31, %v829_v59 }
 0x2b8   : > { %962 = vst.msk [vmem:[%s2841_s20 + $0x10] sm:$0xf] %vm957_vm5, %v2097_v60  ;;  %v2100_v63 = vpack.c.bf16 %v880_v61, %v880_v61  ;;  %v878_v0 = vmax.f32 %v830_v62, 0.0  ;;  %v892_v41 = vpack.c.bf16 %v880_v61, %v2867_v53 }
 0x2ba   : > { %965 = vst.msk [vmem:[%s2841_s20 + $0x1c] sm:$0xf] %vm957_vm5, %v2100_v63  ;;  %v2098_v1 = vpack.c.bf16 %v878_v0, %v878_v0  ;;  %v891_v42 = vpack.c.bf16 %v878_v0, %v2872_v57 }
 0x2bc   : > { %963 = vst.msk [vmem:[%s2841_s20 + $0x14] sm:$0xf] %vm957_vm5, %v2098_v1 }
 0x2bf   : > { %v2340_v2 = vpop.f32.mrf.mxu1 }
 0x2c0   : > { %v851_v3 = vadd.f32 %v2340_v2, %v2829_v31 }
 0x2c1   : > { %v842_v4 = vpop.f32.mrf.mxu1 }
 0x2c2   : > { %v883_v5 = vmax.f32 %v851_v3, 0.0  ;;  %v843_v6 = vadd.f32 %v2829_v31, %v842_v4 }
 0x2c3   : > { %v2341_v7 = vpop.f32.mrf.mxu1 }
 0x2c4   : > { %v2103_v8 = vpack.c.bf16 %v883_v5, %v883_v5  ;;  %v881_v9 = vmax.f32 %v843_v6, 0.0  ;;  %v854_v10 = vadd.f32 %v2341_v7, %v2829_v31 }
 0x2c5   : > { %v845_v11 = vpop.f32.mrf.mxu1 }
 0x2c6   : > { %968 = vst.msk [vmem:[%s2841_s20 + $0x28] sm:$0xf] %vm957_vm5, %v2103_v8  ;;  %v2101_v12 = vpack.c.bf16 %v881_v9, %v881_v9  ;;  %v884_v13 = vmax.f32 %v854_v10, 0.0  ;;  %v846_v14 = vadd.f32 %v2829_v31, %v845_v11 }
 0x2c8   : > { %966 = vst.msk [vmem:[%s2841_s20 + $0x20] sm:$0xf] %vm957_vm5, %v2101_v12  ;;  %v2104_v15 = vpack.c.bf16 %v884_v13, %v884_v13  ;;  %v882_v16 = vmax.f32 %v846_v14, 0.0  ;;  %v894_v40 = vpack.c.bf16 %v884_v13, %v883_v5 }
 0x2ca   : > { %969 = vst.msk [vmem:[%s2841_s20 + $0x2c] sm:$0xf] %vm957_vm5, %v2104_v15  ;;  %v2102_v17 = vpack.c.bf16 %v882_v16, %v882_v16 }
 0x2cc   : > { %967 = vst.msk [vmem:[%s2841_s20 + $0x24] sm:$0xf] %vm957_vm5, %v2102_v17 }
 0x2cf   : > { %v2344_v18 = vpop.f32.mrf.mxu1 }
 0x2d0   : > { %v867_v19 = vadd.f32 %v2344_v18, %v2829_v31 }
 0x2d1   : > { %v858_v20 = vpop.f32.mrf.mxu1 }
 0x2d2   : > { %v887_v21 = vmax.f32 %v867_v19, 0.0  ;;  %v859_v22 = vadd.f32 %v2829_v31, %v858_v20 }
 0x2d3   : > { %v2345_v23 = vpop.f32.mrf.mxu1 }
 0x2d4   : > { %v2107_v24 = vpack.c.bf16 %v887_v21, %v887_v21  ;;  %v885_v25 = vmax.f32 %v859_v22, 0.0  ;;  %v870_v26 = vadd.f32 %v2345_v23, %v2829_v31 }
 0x2d5   : > { %v861_v27 = vpop.f32.mrf.mxu1 }
 0x2d6   : > { %972 = vst.msk [vmem:[%s2841_s20 + $0x38] sm:$0xf] %vm957_vm5, %v2107_v24  ;;  %v2105_v28 = vpack.c.bf16 %v885_v25, %v885_v25  ;;  %v888_v29 = vmax.f32 %v870_v26, 0.0  ;;  %v862_v32 = vadd.f32 %v2829_v31, %v861_v27  ;;  %v893_v31 = vpack.c.bf16 %v882_v16, %v881_v9 }
 0x2d8   : > { %970 = vst.msk [vmem:[%s2841_s20 + $0x30] sm:$0xf] %vm957_vm5, %v2105_v28  ;;  %v896_v33 = vpack.c.bf16 %v888_v29, %v887_v21  ;;  %v2108_v34 = vpack.c.bf16 %v888_v29, %v888_v29  ;;  %v886_v36 = vmax.f32 %v862_v32, 0.0 }
 0x2da   : > { %973 = vst.msk [vmem:[%s2841_s20 + $0x3c] sm:$0xf] %vm957_vm5, %v2108_v34  ;;  %v2106_v37 = vpack.c.bf16 %v886_v36, %v886_v36  ;;  %2347 = vmatpush3.bf16.msra.mxu1 %v896_v33  ;;  %v895_v38 = vpack.c.bf16 %v886_v36, %v885_v25 }
 0x2db   : > { %2348 = vmatprep.subr.bf16.mxu1 %v2634_v30 }
 0x2dc   : > { %971 = vst.msk [vmem:[%s2841_s20 + $0x34] sm:$0xf] %vm957_vm5, %v2106_v37 }
 0x2de   : > { %2349 = vmatpush3.bf16.msra.mxu1 %v895_v38 }
 0x2df   : > { %2350 = vmatprep.subr.bf16.mxu1 %v2634_v30 }
 0x2e2   : > { %2351 = vmatpush3.bf16.msra.mxu1 %v894_v40 }
 0x2e3   : > { %2352 = vmatprep.subr.bf16.mxu1 %v2634_v30 }
 0x2e6   : > { %2353 = vmatpush3.bf16.msra.mxu1 %v893_v31 }
 0x2e7   : > { %2354 = vmatprep.subr.bf16.mxu1 %v2634_v30 }
 0x2ea   : > { %2355 = vmatpush3.bf16.msra.mxu1 %v892_v41 }
 0x2eb   : > { %2356 = vmatprep.subr.bf16.mxu1 %v2634_v30 }
 0x2ee   : > { %2357 = vmatpush3.bf16.msra.mxu1 %v891_v42 }
 0x2ef   : > { %2358 = vmatprep.subr.bf16.mxu1 %v2634_v30 }
 0x2f2   : > { %2359 = vmatpush3.bf16.msra.mxu1 %v890_v45 }
 0x2f3   : > { %2360 = vmatprep.subr.bf16.mxu1 %v2634_v30 }
 0x2f6   : > { %2361 = vmatpush3.bf16.msra.mxu1 %v889_v48 }
 0x2f9   : > { %2363 = vmatmul.mubr.bf16.vlgmr.msra.gmra.mxu1 %v975_v44 }
 0x3b9   : > { %v1010_v49 = vpop.f32.mrf.mxu1 }
 0x3ba   : > { %v1016_v50 = vadd.f32 %v1010_v49, %v974_v46 }
 0x3bb   : > { %v2364_v51 = vpop.f32.mrf.mxu1 }
 0x3bc   : > { %1018 = vst.msk [vmem:[#allocation3] sm:$0x3] %vm1017_vm6, %v1016_v50 }
 0x3bd   : > { %v1013_v52 = vpop.f32.mrf.mxu1 }
 0x3bf   : > { %v2365_v53 = vpop.f32.mrf.mxu1 }
 0x3c0 PF: > { %p1019_p10 = scmp.eq.s32.totalorder %s2619_s28, 1  ;;  %p2032_p11 = scmp.ne.s32.totalorder %s2619_s28, 1 }
 0x3c1   : > { %s1023_s22 = sshra.s32 (!%p2032_p11), %s2723_s13, 5 }
 0x3c2   : > { %1022 = sbr.rel (%p2032_p11) target bundleno = 1898 (0x76a), region = 64  ;;  %s2109_s15 = sshll.u32 (!%p2032_p11), %s1023_s22, 4 }
 0x3c3   : > { %s2932_s24 = scalar_lea.vmem (!%p2032_p11), %s3064_s1, %s2109_s15 }
 0x3c7   : > { %v2531_v30 = vld [vmem:[#allocation2 + $0x78] sm:$0xff]   ;;  %v2533_v39 = vld [vmem:[#allocation2 + $0x70] sm:$0xff]   ;;  %v2535_v45 = vld [vmem:[#allocation2 + $0x68] sm:$0xff]   ;;  %vm1306_vm7 = vcmask 261120   ;;  %vm2637_vm8 = vmmov 0   ;;  %vm1661_vm9 = vcmask 254976  }
 0x3c8   : > { %v2532_v35 = vld [vmem:[#allocation2 + $0x38] sm:$0xff]   ;;  %2202 = vmatprep.subr.bf16.mxu0 %v2531_v30  ;;  %v2534_v43 = vld [vmem:[#allocation2 + $0x30] sm:$0xff]   ;;  %v2536_v47 = vld [vmem:[#allocation2 + $0x28] sm:$0xff]  }
 0x3c9   : > { %2203 = vmatpush3.bf16.msra.mxu0 %v2532_v35  ;;  %v2537_v48 = vld [vmem:[#allocation2 + $0x60] sm:$0xff]   ;;  %v2539_v55 = vld [vmem:[#allocation2 + $0x58] sm:$0xff]   ;;  %v2541_v57 = vld [vmem:[#allocation2 + $0x50] sm:$0xff]  }
 0x3ca   : > { %2204 = vmatprep.subr.bf16.mxu0 %v2533_v39  ;;  %v2538_v54 = vld [vmem:[#allocation2 + $0x20] sm:$0xff]   ;;  %v2540_v56 = vld [vmem:[#allocation2 + $0x18] sm:$0xff]   ;;  %v1029_v58 = vld [vmem:[%s2932_s24 + $0x8] sm:$0xff] }
 0x3cb   : > { %v1037_v59 = vunpack.c.l.s8.bf16 %v1029_v58  ;;  %v2542_v60 = vld [vmem:[#allocation2 + $0x10] sm:$0xff]   ;;  %v2543_v61 = vld [vmem:[#allocation2 + $0x48] sm:$0xff]   ;;  %v2545_v63 = vld [vmem:[#allocation2 + $0x40] sm:$0xff]   ;;  %v1039_v3 = vunpack.c.h.s8.bf16 %v1029_v58 }
 0x3cc   : > { %v2544_v62 = vld [vmem:[#allocation2 + $0x8] sm:$0xff]   ;;  %v2546_v0 = vld [vmem:[#allocation2] sm:$0xff]   ;;  %v1031_v4 = vld [vmem:[%s2932_s24 + $0x18] sm:$0xff] }
 0x3cd   : > { %2205 = vmatpush3.bf16.msra.mxu0 %v2534_v43  ;;  %1212 = vmatprep.mubr.bf16.mxu0 %v1037_v59  ;;  %v1028_v1 = vld [vmem:[%s2932_s24] sm:$0xff]  ;;  %v1041_v6 = vunpack.c.l.s8.bf16 %v1031_v4  ;;  %v1030_v7 = vld [vmem:[%s2932_s24 + $0x10] sm:$0xff]  ;;  %v1043_v9 = vunpack.c.h.s8.bf16 %v1031_v4  ;;  %v1033_v10 = vld [vmem:[%s2932_s24 + $0x28] sm:$0xff] }
 0x3ce   : > { %2206 = vmatprep.subr.bf16.mxu0 %v2535_v45  ;;  %v1036_v2 = vunpack.c.l.s8.bf16 %v1028_v1  ;;  %v1038_v5 = vunpack.c.h.s8.bf16 %v1028_v1  ;;  %v1040_v8 = vunpack.c.l.s8.bf16 %v1030_v7  ;;  %v1042_v11 = vunpack.c.h.s8.bf16 %v1030_v7  ;;  %v1032_v13 = vld [vmem:[%s2932_s24 + $0x20] sm:$0xff]  ;;  %v1035_v16 = vld [vmem:[%s2932_s24 + $0x38] sm:$0xff]  ;;  %v1034_v19 = vld [vmem:[%s2932_s24 + $0x30] sm:$0xff] }
 0x3cf   : > { %v1045_v12 = vunpack.c.l.s8.bf16 %v1033_v10  ;;  %v1044_v14 = vunpack.c.l.s8.bf16 %v1032_v13  ;;  %v1047_v15 = vunpack.c.h.s8.bf16 %v1033_v10  ;;  %v1046_v17 = vunpack.c.h.s8.bf16 %v1032_v13  ;;  %v2547_v23 = vld [vmem:[%s3067_s4 + $0x18] sm:$0xff]   ;;  %v2548_v24 = vld [vmem:[%s3067_s4 + $0x10] sm:$0xff]  }
 0x3d0   : > { %v1049_v18 = vunpack.c.l.s8.bf16 %v1035_v16  ;;  %v1048_v20 = vunpack.c.l.s8.bf16 %v1034_v19  ;;  %v1051_v21 = vunpack.c.h.s8.bf16 %v1035_v16  ;;  %v1050_v22 = vunpack.c.h.s8.bf16 %v1034_v19  ;;  %2366 = vmatprep.subr.bf16.mxu1 %v2547_v23 }
 0x3d1   : > { %2207 = vmatpush3.bf16.msra.mxu0 %v2536_v47  ;;  %2367 = vmatpush3.bf16.msra.mxu1 %v2547_v23 }
 0x3d2   : > { %2208 = vmatprep.subr.bf16.mxu0 %v2537_v48  ;;  %2368 = vmatprep.subr.bf16.mxu1 %v2548_v24 }
 0x3d5   : > { %2209 = vmatpush3.bf16.msra.mxu0 %v2538_v54  ;;  %2369 = vmatpush3.bf16.msra.mxu1 %v2548_v24 }
 0x3d6   : > { %2210 = vmatprep.subr.bf16.mxu0 %v2539_v55 }
 0x3d9   : > { %2211 = vmatpush3.bf16.msra.mxu0 %v2540_v56 }
 0x3da   : > { %2212 = vmatprep.subr.bf16.mxu0 %v2541_v57 }
 0x3dd   : > { %2213 = vmatpush3.bf16.msra.mxu0 %v2542_v60 }
 0x3de   : > { %2214 = vmatprep.subr.bf16.mxu0 %v2543_v61 }
 0x3e1   : > { %2215 = vmatpush3.bf16.msra.mxu0 %v2544_v62 }
 0x3e2   : > { %2216 = vmatprep.subr.bf16.mxu0 %v2545_v63 }
 0x3e5   : > { %2217 = vmatpush3.bf16.msra.mxu0 %v2546_v0 }
 0x3e8   : > { %1213 = vmatmul.mubr.bf16.vlgmr.msra.gmra.mxu0 %v1036_v2 }
 0x3e9   : > { %1220 = vmatprep.mubr.bf16.mxu0 %v1039_v3 }
 0x3f0   : > { %1221 = vmatmul.mubr.bf16.gmra.mxu0 %v1038_v5 }
 0x3f1   : > { %1228 = vmatprep.mubr.bf16.mxu0 %v1041_v6 }
 0x3f8   : > { %1229 = vmatmul.mubr.bf16.gmra.mxu0 %v1040_v8 }
 0x3f9   : > { %1236 = vmatprep.mubr.bf16.mxu0 %v1043_v9 }
 0x400   : > { %1237 = vmatmul.mubr.bf16.gmra.mxu0 %v1042_v11 }
 0x401   : > { %1244 = vmatprep.mubr.bf16.mxu0 %v1045_v12 }
 0x408   : > { %1245 = vmatmul.mubr.bf16.gmra.mxu0 %v1044_v14 }
 0x409   : > { %1252 = vmatprep.mubr.bf16.mxu0 %v1047_v15 }
 0x410   : > { %1253 = vmatmul.mubr.bf16.gmra.mxu0 %v1046_v17  ;;  %v2549_v17 = vld [vmem:[%s3067_s4 + $0x28] sm:$0xff]  }
 0x411   : > { %1260 = vmatprep.mubr.bf16.mxu0 %v1049_v18  ;;  %2386 = vmatprep.subr.bf16.mxu1 %v2549_v17  ;;  %v2550_v18 = vld [vmem:[%s3067_s4 + $0x20] sm:$0xff]  }
 0x418   : > { %1261 = vmatmul.mubr.bf16.gmra.mxu0 %v1048_v20 }
 0x419   : > { %1268 = vmatprep.mubr.bf16.mxu0 %v1051_v21  ;;  %v2051_v21 = vld [vmem:[%s3070_s7 + $0x2] ss:$0 sm:$0xff] }
 0x420   : > { %1269 = vmatmul.mubr.bf16.gmra.mxu0 %v1050_v22 }
 0x4a8   : > { %v2218_v25 = vpop.f32.mrf.mxu0 }
 0x4aa   : > { %v2219_v26 = vpop.f32.mrf.mxu0 }
 0x4ab   : > { %v2220_v29 = vadd.f32 %v2219_v26, %v2218_v25 }
 0x4ac   : > { %v2221_v27 = vpop.f32.mrf.mxu0 }
 0x4ae   : > { %v2222_v28 = vpop.f32.mrf.mxu0 }
 0x4af   : > { %v2223_v32 = vadd.f32 %v2222_v28, %v2221_v27 }
 0x4b0   : > { %v2224_v33 = vpop.f32.mrf.mxu0 }
 0x4b1   : > { %v1277_v34 = vpack.c.bf16 %v2223_v32, %v2220_v29 }
 0x4b2   : > { %v2225_v36 = vpop.f32.mrf.mxu0 }
 0x4b3   : > { %2370 = vmatprep.mubr.msk.bf16.mxu1 %vm1306_vm7, %v1277_v34  ;;  %v2226_v40 = vadd.f32 %v2225_v36, %v2224_v33 }
 0x4b4   : > { %v2227_v37 = vpop.f32.mrf.mxu0 }
 0x4b6   : > { %v2228_v38 = vpop.f32.mrf.mxu0 }
 0x4b7   : > { %v2229_v31 = vadd.f32 %v2228_v38, %v2227_v37 }
 0x4b8   : > { %v2230_v41 = vpop.f32.mrf.mxu0 }
 0x4b9   : > { %v1278_v42 = vpack.c.bf16 %v2229_v31, %v2226_v40 }
 0x4ba   : > { %v2231_v44 = vpop.f32.mrf.mxu0 }
 0x4bb   : > { %2371 = vmatmul.mubr.msk.bf16.vlgmr.msra.gmra.mxu1 %vm1306_vm7, %v1278_v42  ;;  %v2232_v50 = vadd.f32 %v2231_v44, %v2230_v41 }
 0x4bc   : > { %v2233_v46 = vpop.f32.mrf.mxu0  ;;  %2387 = vmatpush3.bf16.msra.mxu1 %v2549_v17 }
 0x4bd   : > { %2388 = vmatprep.subr.bf16.mxu1 %v2550_v18 }
 0x4be   : > { %v2234_v49 = vpop.f32.mrf.mxu0 }
 0x4bf   : > { %v2235_v51 = vadd.f32 %v2234_v49, %v2233_v46 }
 0x4c0   : > { %v2236_v52 = vpop.f32.mrf.mxu0  ;;  %2389 = vmatpush3.bf16.msra.mxu1 %v2550_v18 }
 0x4c1   : > { %v1279_v53 = vpack.c.bf16 %v2235_v51, %v2232_v50 }
 0x4c2   : > { %v2237_v30 = vpop.f32.mrf.mxu0 }
 0x4c3   : > { %2374 = vmatprep.mubr.msk.bf16.mxu1 %vm1306_vm7, %v1279_v53  ;;  %v2238_v43 = vadd.f32 %v2237_v30, %v2236_v52 }
 0x4c4   : > { %v2239_v35 = vpop.f32.mrf.mxu0 }
 0x4c6   : > { %v2240_v39 = vpop.f32.mrf.mxu0 }
 0x4c7   : > { %v2241_v45 = vadd.f32 %v2240_v39, %v2239_v35 }
 0x4c8   : > { %v2242_v47 = vpop.f32.mrf.mxu0 }
 0x4c9   : > { %v1280_v48 = vpack.c.bf16 %v2241_v45, %v2238_v43 }
 0x4ca   : > { %v2243_v54 = vpop.f32.mrf.mxu0 }
 0x4cb   : > { %2375 = vmatmul.mubr.msk.bf16.gmra.mxu1 %vm1306_vm7, %v1280_v48  ;;  %v2244_v57 = vadd.f32 %v2243_v54, %v2242_v47 }
 0x4cc   : > { %v2245_v55 = vpop.f32.mrf.mxu0 }
 0x4ce   : > { %v2246_v56 = vpop.f32.mrf.mxu0 }
 0x4cf   : > { %v2247_v58 = vadd.f32 %v2246_v56, %v2245_v55 }
 0x4d0   : > { %v2248_v59 = vpop.f32.mrf.mxu0 }
 0x4d1   : > { %v1281_v60 = vpack.c.bf16 %v2247_v58, %v2244_v57 }
 0x4d2   : > { %v2249_v61 = vpop.f32.mrf.mxu0 }
 0x4d3   : > { %2378 = vmatprep.mubr.msk.bf16.mxu1 %vm1306_vm7, %v1281_v60  ;;  %v2250_v0 = vadd.f32 %v2249_v61, %v2248_v59 }
 0x4d4   : > { %v2251_v62 = vpop.f32.mrf.mxu0 }
 0x4d6   : > { %v2252_v63 = vpop.f32.mrf.mxu0 }
 0x4d7   : > { %v2253_v1 = vadd.f32 %v2252_v63, %v2251_v62 }
 0x4d8   : > { %v2254_v2 = vpop.f32.mrf.mxu0 }
 0x4d9   : > { %v1282_v3 = vpack.c.bf16 %v2253_v1, %v2250_v0 }
 0x4da   : > { %v2255_v4 = vpop.f32.mrf.mxu0 }
 0x4db   : > { %2379 = vmatmul.mubr.msk.bf16.gmra.mxu1 %vm1306_vm7, %v1282_v3  ;;  %v2256_v7 = vadd.f32 %v2255_v4, %v2254_v2 }
 0x4dc   : > { %v2257_v5 = vpop.f32.mrf.mxu0 }
 0x4de   : > { %v2258_v6 = vpop.f32.mrf.mxu0 }
 0x4df   : > { %v2259_v8 = vadd.f32 %v2258_v6, %v2257_v5 }
 0x4e0   : > { %v2260_v9 = vpop.f32.mrf.mxu0 }
 0x4e1   : > { %v1283_v10 = vpack.c.bf16 %v2259_v8, %v2256_v7 }
 0x4e2   : > { %v2261_v11 = vpop.f32.mrf.mxu0 }
 0x4e3   : > { %2382 = vmatprep.mubr.msk.bf16.mxu1 %vm1306_vm7, %v1283_v10  ;;  %v2262_v14 = vadd.f32 %v2261_v11, %v2260_v9 }
 0x4e4   : > { %v2263_v12 = vpop.f32.mrf.mxu0 }
 0x4e6   : > { %v2264_v13 = vpop.f32.mrf.mxu0 }
 0x4e7   : > { %v2265_v15 = vadd.f32 %v2264_v13, %v2263_v12  ;;  %v2636_v12 = vmov 0.0  }
 0x4e8   : > { %2406 = vmatprep.subr.bf16.mxu1 %v2636_v12 }
 0x4e9   : > { %v1284_v16 = vpack.c.bf16 %v2265_v15, %v2262_v14 }
 0x4eb   : > { %2383 = vmatmul.mubr.msk.bf16.gmra.mxu1 %vm1306_vm7, %v1284_v16 }
 0x57b   : > { %v2372_v19 = vpop.f32.mrf.mxu1 }
 0x57c   : > { %v1374_v25 = vadd.f32 %v2372_v19, %v2051_v21 }
 0x57d   : > { %v1365_v20 = vpop.f32.mrf.mxu1 }
 0x57e   : > { %v1366_v23 = vadd.f32 %v2051_v21, %v1365_v20  ;;  %v1430_v33 = vmax.f32 %v1374_v25, 0.0 }
 0x57f   : > { %v2373_v22 = vpop.f32.mrf.mxu1 }
 0x580   : > { %v1377_v24 = vadd.f32 %v2373_v22, %v2051_v21  ;;  %v1428_v29 = vmax.f32 %v1366_v23, 0.0 }
 0x581   : > { %v1368_v26 = vpop.f32.mrf.mxu1 }
 0x582   : > { %v1369_v27 = vadd.f32 %v2051_v21, %v1368_v26  ;;  %v1431_v28 = vmax.f32 %v1377_v24, 0.0  ;;  %v2062_v26 = vld [vmem:[%s3070_s7 + $0x3] ss:$0 sm:$0xff] }
 0x584   : > { %v1429_v32 = vmax.f32 %v1369_v27, 0.0  ;;  %v1445_v36 = vpack.c.bf16 %v1431_v28, %v1430_v33 }
 0x586   : > { %v1444_v34 = vpack.c.bf16 %v1429_v32, %v1428_v29 }
 0x588   : > { %2390 = vmatprep.mubr.msk.bf16.mxu1 %vm1306_vm7, %v1444_v34 }
 0x589   : > { %2391 = vmatmul.mubr.msk.bf16.vlgmr.msra.gmra.mxu1 %vm1306_vm7, %v1445_v36 }
 0x58b   : > { %v2376_v37 = vpop.f32.mrf.mxu1 }
 0x58c   : > { %v1390_v42 = vadd.f32 %v2376_v37, %v2051_v21 }
 0x58d   : > { %v1381_v38 = vpop.f32.mrf.mxu1 }
 0x58e   : > { %v1382_v31 = vadd.f32 %v2051_v21, %v1381_v38  ;;  %v1434_v52 = vmax.f32 %v1390_v42, 0.0 }
 0x58f   : > { %v2377_v40 = vpop.f32.mrf.mxu1 }
 0x590   : > { %v1393_v41 = vadd.f32 %v2377_v40, %v2051_v21  ;;  %v1432_v50 = vmax.f32 %v1382_v31, 0.0 }
 0x591   : > { %v1384_v44 = vpop.f32.mrf.mxu1 }
 0x592   : > { %v1385_v46 = vadd.f32 %v2051_v21, %v1384_v44  ;;  %v1435_v49 = vmax.f32 %v1393_v41, 0.0 }
 0x594   : > { %v1433_v51 = vmax.f32 %v1385_v46, 0.0  ;;  %v1447_v30 = vpack.c.bf16 %v1435_v49, %v1434_v52 }
 0x596   : > { %v1446_v53 = vpack.c.bf16 %v1433_v51, %v1432_v50 }
 0x598   : > { %2394 = vmatprep.mubr.msk.bf16.mxu1 %vm1306_vm7, %v1446_v53 }
 0x599   : > { %2395 = vmatmul.mubr.msk.bf16.gmra.mxu1 %vm1306_vm7, %v1447_v30 }
 0x59b   : > { %v2380_v35 = vpop.f32.mrf.mxu1 }
 0x59c   : > { %v1406_v48 = vadd.f32 %v2380_v35, %v2051_v21 }
 0x59d   : > { %v1397_v39 = vpop.f32.mrf.mxu1 }
 0x59e   : > { %v1398_v45 = vadd.f32 %v2051_v21, %v1397_v39  ;;  %v1438_v59 = vmax.f32 %v1406_v48, 0.0 }
 0x59f   : > { %v2381_v43 = vpop.f32.mrf.mxu1 }
 0x5a0   : > { %v1409_v47 = vadd.f32 %v2381_v43, %v2051_v21  ;;  %v1436_v57 = vmax.f32 %v1398_v45, 0.0 }
 0x5a1   : > { %v1400_v54 = vpop.f32.mrf.mxu1 }
 0x5a2   : > { %v1401_v55 = vadd.f32 %v2051_v21, %v1400_v54  ;;  %v1439_v56 = vmax.f32 %v1409_v47, 0.0 }
 0x5a4   : > { %v1437_v58 = vmax.f32 %v1401_v55, 0.0  ;;  %v1449_v61 = vpack.c.bf16 %v1439_v56, %v1438_v59 }
 0x5a6   : > { %v1448_v60 = vpack.c.bf16 %v1437_v58, %v1436_v57 }
 0x5a8   : > { %2398 = vmatprep.mubr.msk.bf16.mxu1 %vm1306_vm7, %v1448_v60 }
 0x5a9   : > { %2399 = vmatmul.mubr.msk.bf16.gmra.mxu1 %vm1306_vm7, %v1449_v61 }
 0x5ab   : > { %v2384_v62 = vpop.f32.mrf.mxu1 }
 0x5ac   : > { %v1422_v3 = vadd.f32 %v2384_v62, %v2051_v21 }
 0x5ad   : > { %v1413_v63 = vpop.f32.mrf.mxu1 }
 0x5ae   : > { %v1414_v1 = vadd.f32 %v2051_v21, %v1413_v63  ;;  %v1442_v9 = vmax.f32 %v1422_v3, 0.0 }
 0x5af   : > { %v2385_v0 = vpop.f32.mrf.mxu1 }
 0x5b0   : > { %v1425_v2 = vadd.f32 %v2385_v0, %v2051_v21  ;;  %v1440_v7 = vmax.f32 %v1414_v1, 0.0 }
 0x5b1   : > { %v1416_v4 = vpop.f32.mrf.mxu1 }
 0x5b2   : > { %v1417_v5 = vadd.f32 %v2051_v21, %v1416_v4  ;;  %v1443_v6 = vmax.f32 %v1425_v2, 0.0 }
 0x5b4   : > { %v1441_v8 = vmax.f32 %v1417_v5, 0.0  ;;  %v1451_v11 = vpack.c.bf16 %v1443_v6, %v1442_v9  ;;  %v1611_v6 = vld [vmem:[%s2731_s17] sm:$0x1] }
 0x5b6   : > { %v1450_v10 = vpack.c.bf16 %v1441_v8, %v1440_v7  ;;  %v1610_v7 = vld [vmem:[#allocation4] sm:$0x3] }
 0x5b8   : > { %2402 = vmatprep.mubr.msk.bf16.mxu1 %vm1306_vm7, %v1450_v10 }
 0x5b9   : > { %2403 = vmatmul.mubr.msk.bf16.gmra.mxu1 %vm1306_vm7, %v1451_v11 }
 0x5ba   : > { %2422 = vmatprep.mubr.msk.bf16.mxu1 %vm2637_vm8, %v2636_v12 }
 0x649   : > { %v2392_v13 = vpop.f32.mrf.mxu1 }
 0x64a   : > { %v1540_v59 = vadd.f32 %v2392_v13, %v2062_v26 }
 0x64b   : > { %v1531_v14 = vpop.f32.mrf.mxu1 }
 0x64c   : > { %v1596_v0 = vmax.f32 %v1540_v59, 0.0  ;;  %v1532_v1 = vadd.f32 %v2062_v26, %v1531_v14 }
 0x64d   : > { %v2393_v15 = vpop.f32.mrf.mxu1 }
 0x64e   : > { %v1543_v56 = vadd.f32 %v2393_v15, %v2062_v26  ;;  %v1594_v4 = vmax.f32 %v1532_v1, 0.0 }
 0x64f   : > { %v1534_v16 = vpop.f32.mrf.mxu1 }
 0x650   : > { %v1597_v61 = vmax.f32 %v1543_v56, 0.0  ;;  %v1535_v62 = vadd.f32 %v2062_v26, %v1534_v16 }
 0x652   : > { %v1613_v2 = vpack.c.bf16 %v1597_v61, %v1596_v0  ;;  %v1595_v3 = vmax.f32 %v1535_v62, 0.0 }
 0x654   : > { %v1612_v5 = vpack.c.bf16 %v1595_v3, %v1594_v4 }
 0x659   : > { %v2396_v17 = vpop.f32.mrf.mxu1 }
 0x65a   : > { %v1556_v39 = vadd.f32 %v2396_v17, %v2062_v26 }
 0x65b   : > { %v1547_v18 = vpop.f32.mrf.mxu1 }
 0x65c   : > { %v1600_v54 = vmax.f32 %v1556_v39, 0.0  ;;  %v1548_v55 = vadd.f32 %v2062_v26, %v1547_v18 }
 0x65d   : > { %v2397_v19 = vpop.f32.mrf.mxu1 }
 0x65e   : > { %v1559_v53 = vadd.f32 %v2397_v19, %v2062_v26  ;;  %v1598_v60 = vmax.f32 %v1548_v55, 0.0 }
 0x65f   : > { %v1550_v20 = vpop.f32.mrf.mxu1 }
 0x660   : > { %v1601_v45 = vmax.f32 %v1559_v53, 0.0  ;;  %v1551_v47 = vadd.f32 %v2062_v26, %v1550_v20 }
 0x662   : > { %v1615_v57 = vpack.c.bf16 %v1601_v45, %v1600_v54  ;;  %v1599_v58 = vmax.f32 %v1551_v47, 0.0 }
 0x664   : > { %v1614_v63 = vpack.c.bf16 %v1599_v58, %v1598_v60 }
 0x669   : > { %v2400_v21 = vpop.f32.mrf.mxu1 }
 0x66a   : > { %v1572_v42 = vadd.f32 %v2400_v21, %v2062_v26 }
 0x66b   : > { %v1563_v22 = vpop.f32.mrf.mxu1 }
 0x66c   : > { %v1604_v51 = vmax.f32 %v1572_v42, 0.0  ;;  %v1564_v52 = vadd.f32 %v2062_v26, %v1563_v22 }
 0x66d   : > { %v2401_v23 = vpop.f32.mrf.mxu1 }
 0x66e   : > { %v1575_v40 = vadd.f32 %v2401_v23, %v2062_v26  ;;  %v1602_v43 = vmax.f32 %v1564_v52, 0.0 }
 0x66f   : > { %v1566_v24 = vpop.f32.mrf.mxu1 }
 0x670   : > { %v1605_v46 = vmax.f32 %v1575_v40, 0.0  ;;  %v1567_v49 = vadd.f32 %v2062_v26, %v1566_v24 }
 0x672   : > { %v1617_v30 = vpack.c.bf16 %v1605_v46, %v1604_v51  ;;  %v1603_v35 = vmax.f32 %v1567_v49, 0.0 }
 0x674   : > { %v1616_v48 = vpack.c.bf16 %v1603_v35, %v1602_v43 }
 0x679   : > { %v2404_v25 = vpop.f32.mrf.mxu1 }
 0x67a   : > { %v1588_v28 = vadd.f32 %v2404_v25, %v2062_v26 }
 0x67b   : > { %v1579_v27 = vpop.f32.mrf.mxu1 }
 0x67c   : > { %v1608_v34 = vmax.f32 %v1588_v28, 0.0  ;;  %v1580_v36 = vadd.f32 %v2062_v26, %v1579_v27 }
 0x67d   : > { %v2405_v29 = vpop.f32.mrf.mxu1 }
 0x67e   : > { %v1591_v32 = vadd.f32 %v2405_v29, %v2062_v26  ;;  %v1606_v44 = vmax.f32 %v1580_v36, 0.0 }
 0x67f   : > { %v1582_v33 = vpop.f32.mrf.mxu1 }
 0x680   : > { %v1609_v37 = vmax.f32 %v1591_v32, 0.0  ;;  %v1583_v38 = vadd.f32 %v2062_v26, %v1582_v33 }
 0x682   : > { %v1619_v31 = vpack.c.bf16 %v1609_v37, %v1608_v34  ;;  %v1607_v41 = vmax.f32 %v1583_v38, 0.0 }
 0x684   : > { %2407 = vmatpush3.bf16.msra.mxu1 %v1619_v31  ;;  %v1618_v50 = vpack.c.bf16 %v1607_v41, %v1606_v44 }
 0x685   : > { %2408 = vmatprep.subr.bf16.mxu1 %v2636_v12 }
 0x688   : > { %2409 = vmatpush3.bf16.msra.mxu1 %v1618_v50 }
 0x689   : > { %2410 = vmatprep.subr.bf16.mxu1 %v2636_v12 }
 0x68c   : > { %2411 = vmatpush3.bf16.msra.mxu1 %v1617_v30 }
 0x68d   : > { %2412 = vmatprep.subr.bf16.mxu1 %v2636_v12 }
 0x690   : > { %2413 = vmatpush3.bf16.msra.mxu1 %v1616_v48 }
 0x691   : > { %2414 = vmatprep.subr.bf16.mxu1 %v2636_v12 }
 0x694   : > { %2415 = vmatpush3.bf16.msra.mxu1 %v1615_v57 }
 0x695   : > { %2416 = vmatprep.subr.bf16.mxu1 %v2636_v12 }
 0x698   : > { %2417 = vmatpush3.bf16.msra.mxu1 %v1614_v63 }
 0x699   : > { %2418 = vmatprep.subr.bf16.mxu1 %v2636_v12 }
 0x69c   : > { %2419 = vmatpush3.bf16.msra.mxu1 %v1613_v2 }
 0x69d   : > { %2420 = vmatprep.subr.bf16.mxu1 %v2636_v12 }
 0x6a0   : > { %2421 = vmatpush3.bf16.msra.mxu1 %v1612_v5 }
 0x6a3   : > { %2423 = vmatmul.mubr.bf16.vlgmr.msra.gmra.mxu1 %v1611_v6 }
 0x763   : > { %v1654_v8 = vpop.f32.mrf.mxu1 }
 0x764   : > { %v1660_v9 = vadd.f32 %v1654_v8, %v1610_v7 }
 0x765   : > { %v2424_v10 = vpop.f32.mrf.mxu1 }
 0x766   : > { %1662 = vst.msk [vmem:[#allocation4] sm:$0x3] %vm1661_vm9, %v1660_v9 }
 0x767   : > { %v1657_v11 = vpop.f32.mrf.mxu1 }
 0x769   : > { %v2425_v13 = vpop.f32.mrf.mxu1 }
 0x76a PF: > { %p1663_p12 = scmp.eq.s32.totalorder %s2615_s27, 1 }
 0x76c   : > { %p1664_p13 = pnand %p1663_p12, %p1019_p10 }
 0x76e   : > { %1667 = sbr.rel (%p1664_p13) target bundleno = 2635 (0xa4b), region = 68 }
 0x773   : > { %v2551_v12 = vld [vmem:[%s3068_s5 + $0x18] sm:$0xff]   ;;  %v2638_v14 = vmov 0.0   ;;  %v2552_v15 = vld [vmem:[%s3068_s5 + $0x10] sm:$0xff]   ;;  %vm2639_vm10 = vmmov 0   ;;  %v1670_v16 = vld [vmem:[#allocation4] sm:$0x3] }
 0x774   : > { %2426 = vmatprep.subr.bf16.mxu1 %v2638_v14  ;;  %2442 = vmatprep.subr.bf16.mxu0 %v2638_v14  ;;  %v2553_v17 = vld [vmem:[%s3068_s5 + $0x8] sm:$0xff]   ;;  %v1671_v18 = vpack.c.bf16 %v1670_v16, %v1670_v16  ;;  %vm1692_vm11 = vcmask 261120   ;;  %v2556_v20 = vld [vmem:[%s3069_s6 + $0x20] sm:$0xff]   ;;  %v2557_v24 = vld [vmem:[%s3069_s6 + $0x18] sm:$0xff]   ;;  %vm1852_vm12 = vcmask 785408   ;;  %vm1896_vm13 = vcmask 25600  }
 0x775   : > { %2427 = vmatpush3.bf16.msra.mxu1 %v2551_v12  ;;  %2430 = vmatprep.mubr.msk.bf16.mxu1 %vm2639_vm10, %v2638_v14  ;;  %v2555_v19 = vld [vmem:[%s3069_s6 + $0x28] sm:$0xff]   ;;  %v2554_v21 = vld [vmem:[%s3068_s5] sm:$0xff]   ;;  %v2558_v25 = vld [vmem:[%s3069_s6 + $0x10] sm:$0xff]  }
 0x776   : > { %2428 = vmatprep.subr.bf16.mxu1 %v2638_v14  ;;  %2454 = vmatprep.mubr.msk.bf16.mxu0 %vm2639_vm10, %v2638_v14  ;;  %v1668_v22 = vld [vmem:[#allocation3] sm:$0x3]  ;;  %v2559_v26 = vld [vmem:[%s3069_s6 + $0x8] sm:$0xff]   ;;  %v2079_v36 = vld [vmem:[%s3070_s7 + $0x4] ss:$0 sm:$0xff] }
 0x777   : > { %2443 = vmatpush3.bf16.msra.mxu0 %v2555_v19  ;;  %v1669_v23 = vpack.c.bf16 %v1668_v22, %v1668_v22  ;;  %v2560_v27 = vld [vmem:[%s3069_s6] sm:$0xff]  }
 0x778   : > { %2444 = vmatprep.subr.bf16.mxu0 %v2638_v14  ;;  %v2080_v46 = vld [vmem:[%s3070_s7 + $0x5] ss:$0 sm:$0xff] }
 0x779   : > { %2429 = vmatpush3.bf16.msra.mxu1 %v2552_v15 }
 0x77a   : > { %2434 = vmatprep.subr.bf16.mxu1 %v2638_v14 }
 0x77b   : > { %2445 = vmatpush3.bf16.msra.mxu0 %v2556_v20 }
 0x77c   : > { %2431 = vmatmul.mubr.msk.bf16.vlgmr.msra.gmra.mxu1 %vm1692_vm11, %v1671_v18  ;;  %2446 = vmatprep.subr.bf16.mxu0 %v2638_v14 }
 0x77d   : > { %2435 = vmatpush3.bf16.msra.mxu1 %v2553_v17  ;;  %2438 = vmatprep.mubr.msk.bf16.mxu1 %vm2639_vm10, %v2638_v14 }
 0x77e   : > { %2436 = vmatprep.subr.bf16.mxu1 %v2638_v14 }
 0x77f   : > { %2447 = vmatpush3.bf16.msra.mxu0 %v2557_v24 }
 0x780   : > { %2448 = vmatprep.subr.bf16.mxu0 %v2638_v14 }
 0x781   : > { %2437 = vmatpush3.bf16.msra.mxu1 %v2554_v21 }
 0x783   : > { %2449 = vmatpush3.bf16.msra.mxu0 %v2558_v25 }
 0x784   : > { %2439 = vmatmul.mubr.msk.bf16.vlgmr.msra.gmra.mxu1 %vm1692_vm11, %v1669_v23  ;;  %2450 = vmatprep.subr.bf16.mxu0 %v2638_v14 }
 0x787   : > { %2451 = vmatpush3.bf16.msra.mxu0 %v2559_v26 }
 0x788   : > { %2452 = vmatprep.subr.bf16.mxu0 %v2638_v14 }
 0x78b   : > { %2453 = vmatpush3.bf16.msra.mxu0 %v2560_v27 }
 0x83c   : > { %v1730_v28 = vpop.f32.mrf.mxu1 }
 0x83e   : > { %v2432_v29 = vpop.f32.mrf.mxu1 }
 0x840   : > { %v1733_v32 = vpop.f32.mrf.mxu1 }
 0x842   : > { %v2433_v33 = vpop.f32.mrf.mxu1 }
 0x844   : > { %v1785_v34 = vpop.f32.mrf.mxu1 }
 0x845   : > { %v1786_v37 = vadd.f32 %v1785_v34, %v1730_v28 }
 0x846   : > { %v2440_v38 = vpop.f32.mrf.mxu1 }
 0x847   : > { %v1796_v40 = vadd.f32 %v2079_v36, %v1786_v37 }
 0x848   : > { %v1788_v31 = vpop.f32.mrf.mxu1 }
 0x849   : > { %v1797_v41 = vmax.f32 %v1796_v40, 0.0 }
 0x84a   : > { %v2441_v42 = vpop.f32.mrf.mxu1 }
 0x84b   : > { %v1798_v44 = vpack.c.bf16 %v1797_v41, %v1797_v41 }
 0x84d   : > { %2455 = vmatmul.mubr.msk.bf16.vlgmr.msra.gmra.mxu0 %vm1852_vm12, %v1798_v44 }
 0x90d   : > { %v1890_v49 = vpop.f32.mrf.mxu0 }
 0x90e   : > { %v1891_v50 = vadd.f32 %v2080_v46, %v1890_v49 }
 0x90f   : > { %v2456_v51 = vpop.f32.mrf.mxu0 }
 0x910   : > { %v1897_v52 = vsel %vm1896_vm13, %v1891_v50, -inf }
 0x911   : > { %1898 = vmax.xlane.f32.xlu0 %v1897_v52  ;;  %v1893_v53 = vpop.f32.mrf.mxu0 }
 0x913   : > { %v2457_v30 = vpop.f32.mrf.mxu0 }
 0x99a   : > { %v1899_v35 = vpop.xlane.xlu0 %1898 }
 0x99b   : > { %v1900_v39 = vsub.f32 %v1891_v50, %v1899_v35 }
 0x99d   : > { %v1901_v43 = vmul.f32 1.442695, %v1900_v39 }
 0x99f   : > { %2561 = vpow2.f32 %v1901_v43 }
 0x9ac   : > { %v2562_v45 = vpop.eup %2561 }
 0x9ad   : > { %v1903_v47 = vsel %vm1896_vm13, %v2562_v45, 0.0 }
 0x9ae   : > { %1904 = vadd.xlane.f32.xlu0 %v1903_v47 }
 0xa37   : > { %v1905_v48 = vpop.xlane.xlu0 %1904 }
 0xa38   : > { %2563 = vlog2.f32 %v1905_v48 }
 0xa45   : > { %v2564_v54 = vpop.eup %2563 }
 0xa46   : > { %v1907_v55 = vmul.f32 0.6931472, %v2564_v54 }
 0xa48   : > { %v1908_v56 = vsub.f32 %v1900_v39, %v1907_v55 }
 0xa4a   : > { %1909 = vst.msk [vmem:[#allocation5] sm:$0x3] %vm1896_vm13, %v1908_v56 }
 0xa4b PF: > { %p3033_p0 = scmp.eq.s32.totalorder %s1971_s10, 3  ;;  %s2640_s19 = smov [#allocation5]  }
 0xa4c   : > { %s1917_s18 = sshll.u32 %s2640_s19, 4  ;;  %s1918_s18 = int_to_ptr.vmem [resolvable:$true] %s1917_s18 }
 0xa4d   : > { %s2565_s20 = scalar_lea.vmem %s1918_s18, 32  ;;  %p2572_p4 = scmp.lt.s32.totalorder %s1918_s18, %s1918_s18 }
 0xa4e   : > { %p2566_p1 = scmp.ne.s32.totalorder %s1918_s18, %s2565_s20  ;;  %p2573_p5 = scmp.lt.s32.totalorder %s2565_s20, %s2565_s20 }
 0xa50   : > { %p2567_p2 = pnand %p2566_p1, %p3033_p0  ;;  %p2574_p6 = por %p2573_p5, %p2572_p4 }
 0xa52   : > { %p2568_p3 = pneg %p2567_p2 }
 0xa54   : > { %p2575_p7 = pnand %p2574_p6, %p2568_p3 }
 0xa56   : > { %2578 = shalt.err (!%p2575_p7)
}
 0xa57   : > { %2460 = dma.vmem_to_hbm [thread:$0]  (%p3033_p0), %s1918_s18, 32, %s3071_s8, [#allocation6]  }
 0xa58   : > { %2610 = dma.done.wait (%p3033_p0), [#allocation6], 32  }
 0xa59   : > { %2612 = vsyncadd (%p3033_p0), [#allocation6], 4294967264 }
 0xa5a PF: > { %s19_s9 = sadd.s32 1, %s2631_s9   ;;  %s3073_s27 = smov %s2623_s29 }
 0xa5b   : > { %p16_p8 = scmp.ge.s32.totalorder %s19_s9, 6   ;;  %s3074_s28 = smov %s2627_s30 }
 0xa5c   : > { %s3075_s29 = smov %s3078_s11  ;;  %s3076_s30 = smov %s3082_s12 }
 0xa5d   :  { %18 = sbr.rel (!%p16_p8) target bundleno = 3 (0x3), region = 98 }
 0xa62   :  { %1930 = vsyncpa [#allocation6], 1 }
 0xa63   :  { %1932 = vsyncpa [#allocation6 + $0x1], 1 }

</bundles_post_ra>
